<compile_context>
chip_gen: v7x
topology: tpu7x:2x2x1
jax: 0.10.0
libtpu: 0.0.40
codegen_flags: <defaults>
</compile_context>

<pallas_src>
import functools
import math

import jax
import jax.numpy as jnp
from jax.experimental import pallas as pl
from jax.experimental.pallas import tpu as pltpu


# ----------------------------------------------------------------------------
# conv1: 7x7, Cin=1 -> Cout=16, VPU stencil (W in lanes, lane-dense output)
# ----------------------------------------------------------------------------
def _conv1_kernel(x_ref, w_ref, b_ref, o_ref, *, th, W, kh, kw, cout):
    s = pl.program_id(1)
    r0 = pl.multiple_of(s * th, th)
    # aligned band fetch (th + 8 rows covers the kh-1 <= 6 halo)
    band = x_ref[pl.ds(r0, th + 8), :]                      # [th+8, Wp] f32
    # hoist the kh*kw shifted windows once, reuse across output channels
    shifted = []
    for dy in range(kh):
        for dx in range(kw):
            shifted.append(band[dy:dy + th, dx:dx + W])     # [th, W]
    for c in range(cout):
        acc = w_ref[c, 0] * shifted[0]
        for t in range(1, kh * kw):
            acc = acc + w_ref[c, t] * shifted[t]
        o_ref[c, :, :] = jnp.maximum(acc + b_ref[c], 0.0)


def conv1_stencil(x, w, b, th=32):
    """x:[B,H,W] f32, w:[7,7,1,16], b:[16] -> [B,16,H,W] f32 (conv+bias+relu)."""
    B, H, W = x.shape
    kh, kw, _, cout = w.shape
    ph, pw = kh // 2, kw // 2
    n_strips = H // th
    Hp = H + 8                                   # top pad ph, bottom pad 8-ph
    Wp = W + (kw - 1)
    xp = jnp.pad(x.astype(jnp.float32),
                 ((0, 0), (ph, Hp - H - ph), (pw, kw - 1 - pw)))
    wt = jnp.transpose(w[:, :, 0, :], (2, 0, 1)).reshape(cout, kh * kw)
    return pl.pallas_call(
        functools.partial(_conv1_kernel, th=th, W=W, kh=kh, kw=kw, cout=cout),
        out_shape=jax.ShapeDtypeStruct((B, cout, H, W), jnp.float32),
        grid=(B, n_strips),
        in_specs=[
            pl.BlockSpec((None, Hp, Wp), lambda bb, s: (bb, 0, 0)),
            pl.BlockSpec(memory_space=pltpu.MemorySpace.SMEM),
            pl.BlockSpec(memory_space=pltpu.MemorySpace.SMEM),
        ],
        out_specs=pl.BlockSpec((None, cout, th, W), lambda bb, s: (bb, 0, s, 0)),
        compiler_params=pltpu.CompilerParams(
            dimension_semantics=("parallel", "arbitrary"),
            vmem_limit_bytes=48 * 1024 * 1024),
    )(xp, wt.astype(jnp.float32), b.astype(jnp.float32))


# ----------------------------------------------------------------------------
# conv2 / conv3: NHWC, in-kernel tap packing -> one MXU dot per kernel row
# ----------------------------------------------------------------------------
def _conv_nhwc_kernel(x_ref, w_ref, b_ref, o_ref, *, th, W, kh, kw, cin, cout):
    s = pl.program_id(1)
    r0 = s * th
    band = x_ref[pl.ds(r0, th + kh - 1), :, :]              # [th+kh-1, Wp, cin] bf16
    acc = None
    for dy in range(kh):
        rows = band[dy:dy + th]                             # [th, Wp, cin]
        taps = [rows[:, dx:dx + W, :] for dx in range(kw)]  # kw x [th, W, cin]
        patch = taps[0] if kw == 1 else jnp.concatenate(taps, axis=-1)
        a = patch.reshape(th * W, kw * cin)                 # stays in VMEM
        contrib = jnp.dot(a, w_ref[dy], preferred_element_type=jnp.float32)
        acc = contrib if acc is None else acc + contrib
    z = jnp.maximum(acc + b_ref[...], 0.0)                  # bias + relu
    o_ref[...] = z.reshape(th, W, cout)


def conv_nhwc(x, w, b, th):
    """x:[B,H,W,Cin], w:[kh,kw,Cin,Cout], b:[Cout] -> [B,H,W,Cout] f32."""
    B, H, W, cin = x.shape
    kh, kw, _, cout = w.shape
    ph, pw = kh // 2, kw // 2
    Hp, Wp = H + kh - 1, W + kw - 1
    n_strips = H // th
    xp = jnp.pad(x, ((0, 0), (ph, kh - 1 - ph), (pw, kw - 1 - pw), (0, 0)))
    xp = xp.astype(jnp.bfloat16)
    wm = w.reshape(kh, kw * cin, cout).astype(jnp.bfloat16)
    bm = b.reshape(1, cout).astype(jnp.float32)
    return pl.pallas_call(
        functools.partial(_conv_nhwc_kernel, th=th, W=W, kh=kh, kw=kw,
                          cin=cin, cout=cout),
        out_shape=jax.ShapeDtypeStruct((B, H, W, cout), jnp.float32),
        grid=(B, n_strips),
        in_specs=[
            pl.BlockSpec((None, Hp, Wp, cin), lambda bb, s: (bb, 0, 0, 0)),
            pl.BlockSpec((kh, kw * cin, cout), lambda bb, s: (0, 0, 0)),
            pl.BlockSpec((1, cout), lambda bb, s: (0, 0)),
        ],
        out_specs=pl.BlockSpec((None, th, W, cout), lambda bb, s: (bb, s, 0, 0)),
        compiler_params=pltpu.CompilerParams(
            dimension_semantics=("parallel", "arbitrary"),
            vmem_limit_bytes=48 * 1024 * 1024),
    )(xp, wm, bm)


# ----------------------------------------------------------------------------
# fused MLP head: Linear(4096,256)+ReLU -> Linear(256,64)+ReLU -> Linear(64,1)+Sigmoid
# ----------------------------------------------------------------------------
def _mlp_kernel(h_ref, w1_ref, b1_ref, w2_ref, b2_ref, w3_ref, b3_ref, o_ref):
    h1 = jnp.dot(h_ref[...], w1_ref[...], preferred_element_type=jnp.float32)
    h1 = jnp.maximum(h1 + b1_ref[...], 0.0).astype(jnp.bfloat16)
    # nn.Dropout(0.5) is identity at inference
    h2 = jnp.dot(h1, w2_ref[...], preferred_element_type=jnp.float32)
    h2 = jnp.maximum(h2 + b2_ref[...], 0.0).astype(jnp.bfloat16)
    z = jnp.dot(h2, w3_ref[...], preferred_element_type=jnp.float32) + b3_ref[...]
    o_ref[...] = 1.0 / (1.0 + jnp.exp(-z))


def mlp_head(h, params):
    B = h.shape[0]
    return pl.pallas_call(
        _mlp_kernel,
        out_shape=jax.ShapeDtypeStruct((B, 1), jnp.float32),
    )(h.astype(jnp.bfloat16),
      params["l1_w"].astype(jnp.bfloat16),
      params["l1_b"].reshape(1, -1).astype(jnp.float32),
      params["l2_w"].astype(jnp.bfloat16),
      params["l2_b"].reshape(1, -1).astype(jnp.float32),
      params["l3_w"].astype(jnp.bfloat16),
      params["l3_b"].reshape(1, -1).astype(jnp.float32))


# ----------------------------------------------------------------------------
# confidence scaling: whole batch, one lane-dense block
# ----------------------------------------------------------------------------
def _scale_kernel(m_ref, c_ref, o_ref):
    o_ref[...] = m_ref[...] * c_ref[...]


def scale_masks(mask, conf):
    """mask:[B,H,W], conf:[B,1] -> [B,1,H,W]."""
    B, H, W = mask.shape
    out = pl.pallas_call(
        _scale_kernel,
        out_shape=jax.ShapeDtypeStruct((B, H * W), jnp.float32),
    )(mask.reshape(B, H * W).astype(jnp.float32), conf.astype(jnp.float32))
    return out.reshape(B, 1, H, W)


# ----------------------------------------------------------------------------
# pooling (cheap mem-bound reshapes, left to XLA)
# ----------------------------------------------------------------------------
def maxpool2_nchw(x):
    B, C, H, W = x.shape
    return x.reshape(B, C, H // 2, 2, W // 2, 2).max(axis=(3, 5))


def maxpool2_nhwc(x):
    B, H, W, C = x.shape
    return x.reshape(B, H // 2, 2, W // 2, 2, C).max(axis=(2, 4))


def adaptive_avgpool_8(x):
    B, H, W, C = x.shape
    return x.reshape(B, 8, H // 8, 8, W // 8, C).mean(axis=(2, 4))


# ----------------------------------------------------------------------------
# MinimalClassifier forward (all conv / linear hot paths in Pallas)
# ----------------------------------------------------------------------------
def init_params(key):
    ks = jax.random.split(key, 6)

    def conv_w(k, kh, kw, cin, cout):
        std = (2.0 / (kh * kw * cin)) ** 0.5
        return jax.random.normal(k, (kh, kw, cin, cout), jnp.float32) * std

    def lin_w(k, fin, fout):
        std = (2.0 / fin) ** 0.5
        return jax.random.normal(k, (fin, fout), jnp.float32) * std

    return {
        "c1_w": conv_w(ks[0], 7, 7, 1, 16),  "c1_b": jnp.zeros((16,), jnp.float32),
        "c2_w": conv_w(ks[1], 5, 5, 16, 32), "c2_b": jnp.zeros((32,), jnp.float32),
        "c3_w": conv_w(ks[2], 3, 3, 32, 64), "c3_b": jnp.zeros((64,), jnp.float32),
        "l1_w": lin_w(ks[3], 64 * 8 * 8, 256), "l1_b": jnp.zeros((256,), jnp.float32),
        "l2_w": lin_w(ks[4], 256, 64),        "l2_b": jnp.zeros((64,), jnp.float32),
        "l3_w": lin_w(ks[5], 64, 1),          "l3_b": jnp.zeros((1,), jnp.float32),
    }


def minimal_classifier(params, mask256):
    """mask256:[B,256,256] f32 -> confidence [B,1] in (0,1)."""
    B = mask256.shape[0]
    h = conv1_stencil(mask256, params["c1_w"], params["c1_b"], th=32)  # [B,16,256,256]
    h = maxpool2_nchw(h)                                               # [B,16,128,128]
    h = jnp.transpose(h, (0, 2, 3, 1))                                 # NHWC
    h = conv_nhwc(h, params["c2_w"], params["c2_b"], th=16)            # [B,128,128,32]
    h = maxpool2_nhwc(h)                                               # [B,64,64,32]
    h = conv_nhwc(h, params["c3_w"], params["c3_b"], th=64)            # [B,64,64,64]
    h = adaptive_avgpool_8(h)                                          # [B,8,8,64]
    # flatten in PyTorch NCHW order: [B, C*8*8]
    h = jnp.transpose(h, (0, 3, 1, 2)).reshape(B, -1)                  # [B,4096]
    return mlp_head(h, params)                                         # [B,1]


# ----------------------------------------------------------------------------
# ClassicalPreprocessor: one fused Pallas pass per sample
# (separable Gaussians + adaptive threshold + close/open morphology in VMEM)
# ----------------------------------------------------------------------------
def _gauss_taps(ksize, sigma):
    r = (ksize - 1) / 2.0
    vals = [math.exp(-((i - r) ** 2) / (2.0 * sigma * sigma)) for i in range(ksize)]
    s = sum(vals)
    return tuple(v / s for v in vals)


def _preprocess_kernel(x_ref, o_ref, *, H, W, P, g5, g11):
    img = x_ref[...]                               # [Hc, Wc] f32, zero ring width P
    Hc, Wc = img.shape

    def sep_blur(a, taps):
        r = (len(taps) - 1) // 2
        # horizontal (lane) pass
        acc = None
        for k, wgt in enumerate(taps):
            sh = pltpu.roll(a, (r - k) % Wc, axis=1)
            acc = wgt * sh if acc is None else acc + wgt * sh
        b = acc
        # vertical (sublane) pass
        acc = None
        for k, wgt in enumerate(taps):
            sh = pltpu.roll(b, (r - k) % Hc, axis=0)
            acc = wgt * sh if acc is None else acc + wgt * sh
        return acc

    blurred = sep_blur(img, g5)        # GaussianBlur(5x5, sigma=1.1)
    local_mean = sep_blur(blurred, g11)  # Gaussian-weighted 11x11 local mean

    rows = jax.lax.broadcasted_iota(jnp.int32, (Hc, Wc), 0)
    cols = jax.lax.broadcasted_iota(jnp.int32, (Hc, Wc), 1)
    inside = ((rows >= P) & (rows < P + H) & (cols >= P) & (cols < P + W))
    inside_f = inside.astype(jnp.float32)
    outside_f = 1.0 - inside_f

    # adaptiveThreshold(GAUSSIAN_C, blockSize=11, C=2): pixel > local_mean - 2
    m = jnp.where(blurred > local_mean - 2.0, 1.0, 0.0) * inside_f

    # 3x3 ellipse structuring element == cross
    def dilate(a):
        n = jnp.maximum(a, pltpu.roll(a, 1, axis=0))
        n = jnp.maximum(n, pltpu.roll(a, Hc - 1, axis=0))
        n = jnp.maximum(n, pltpu.roll(a, 1, axis=1))
        n = jnp.maximum(n, pltpu.roll(a, Wc - 1, axis=1))
        return n

    def erode(a):
        # outside the image counts as foreground for erosion (cv2-style border)
        a = jnp.maximum(a, outside_f)
        n = jnp.minimum(a, pltpu.roll(a, 1, axis=0))
        n = jnp.minimum(n, pltpu.roll(a, Hc - 1, axis=0))
        n = jnp.minimum(n, pltpu.roll(a, 1, axis=1))
        n = jnp.minimum(n, pltpu.roll(a, Wc - 1, axis=1))
        return n * inside_f

    m = erode(dilate(m))   # MORPH_CLOSE
    m = dilate(erode(m))   # MORPH_OPEN
    m = m * inside_f
    o_ref[...] = m[P:P + H, P:P + W]


def classical_preprocess(drr):
    """drr:[B,1,H,W] -> binary-ish float mask [B,H,W] (approx of cv2 pipeline)."""
    B, _, H, W = drr.shape
    x = drr[:, 0].astype(jnp.float32)
    mn = x.min(axis=(1, 2), keepdims=True)
    mx = x.max(axis=(1, 2), keepdims=True)
    xn = jnp.floor((x - mn) / jnp.maximum(mx - mn, 1e-8) * 255.0)  # uint8 approx
    P = 16                                   # halo ring absorbs all filter radii
    Hc, Wc = H + 2 * P, W + 2 * P
    xp = jnp.pad(xn, ((0, 0), (P, P), (P, P)))
    g5 = _gauss_taps(5, 1.1)                 # cv2 sigma for ksize=5, sigma=0
    g11 = _gauss_taps(11, 2.0)               # cv2 sigma for blockSize=11
    # TODO(synk): cv2.findContours + area/circularity filtering has no Pallas/JAX
    # equivalent (data-dependent host-side geometry); the cleaned mask is used as-is.
    return pl.pallas_call(
        functools.partial(_preprocess_kernel, H=H, W=W, P=P, g5=g5, g11=g11),
        out_shape=jax.ShapeDtypeStruct((B, H, W), jnp.float32),
        grid=(B,),
        in_specs=[pl.BlockSpec((None, Hc, Wc), lambda b: (b, 0, 0))],
        out_specs=pl.BlockSpec((None, H, W), lambda b: (b, 0, 0)),
        compiler_params=pltpu.CompilerParams(dimension_semantics=("parallel",)),
    )(xp)


# ----------------------------------------------------------------------------
# HybridModel.forward
# ----------------------------------------------------------------------------
def hybrid_forward(params, xray, drr):
    """xray:[B,1,H,W] (unused, as in the reference), drr:[B,1,H,W] NCHW."""
    B, _, H, W = drr.shape
    mask = classical_preprocess(drr)                                   # [B,H,W]
    mask256 = jax.image.resize(mask, (B, 256, 256), method="nearest")  # F.interpolate(nearest)
    conf = minimal_classifier(params, mask256)                         # [B,1]
    # All-zero masks stay all-zero after scaling, matching the zero-sum branch.
    out = scale_masks(mask, conf)                                      # [B,1,H,W]
    return out, out


if __name__ == "__main__":
    key = jax.random.PRNGKey(0)
    kp, kx, kd = jax.random.split(key, 3)
    params = init_params(kp)

    B, H, W = 2, 32, 32
    xray = jax.random.normal(kx, (B, 1, H, W), jnp.float32)
    drr = jax.random.normal(kd, (B, 1, H, W), jnp.float32)

    out1, out2 = hybrid_forward(params, xray, drr)
    jax.block_until_ready(out1)
    jax.block_until_ready(out2)
    assert out1.shape == (B, 1, H, W) and out2.shape == (B, 1, H, W)
    assert bool(jnp.all(jnp.isfinite(out1)))
    print("KERNEL_OK")
</pallas_src>

<mosaic_0001>
module attributes {stable_mosaic.version = 11 : i64} {
  func.func @_preprocess_kernel(%arg0: i32, %arg1: memref<1x64x64xf32, #tpu.memory_space<vmem>>, %arg2: memref<1x32x32xf32, #tpu.memory_space<vmem>>) attributes {dimension_semantics = [#tpu.dimension_semantics<parallel>], iteration_bounds = array<i64: 2>, scalar_prefetch = 0 : i64, scratch_operands = 0 : i64, tpu.core_type = #tpu.core_type<tc>, window_params = [{transform_indices = @transform_0, window_bounds = array<i64: 1, 64, 64>}, {transform_indices = @transform_1, window_bounds = array<i64: 1, 32, 32>}]} {
    %c0 = arith.constant 0 : index
    %c0_0 = arith.constant 0 : index
    %c0_1 = arith.constant 0 : index
    %0 = vector.load %arg1[%c0, %c0_0, %c0_1] : memref<1x64x64xf32, #tpu.memory_space<vmem>>, vector<1x64x64xf32>
    %1 = vector.shape_cast %0 : vector<1x64x64xf32> to vector<64x64xf32>
    %c2_i32 = arith.constant 2 : i32
    %2 = tpu.dynamic_rotate %1 by %c2_i32 dim 1 : vector<64x64xf32>, i32 -> vector<64x64xf32>
    %cst = arith.constant 0.0707663745 : f32
    %3 = vector.broadcast %cst : f32 to vector<64x64xf32>
    %4 = arith.mulf %3, %2 : vector<64x64xf32>
    %c1_i32 = arith.constant 1 : i32
    %5 = tpu.dynamic_rotate %1 by %c1_i32 dim 1 : vector<64x64xf32>, i32 -> vector<64x64xf32>
    %cst_2 = arith.constant 0.244460404 : f32
    %6 = vector.broadcast %cst_2 : f32 to vector<64x64xf32>
    %7 = arith.mulf %6, %5 : vector<64x64xf32>
    %8 = arith.addf %4, %7 : vector<64x64xf32>
    %c0_i32 = arith.constant 0 : i32
    %9 = tpu.dynamic_rotate %1 by %c0_i32 dim 1 : vector<64x64xf32>, i32 -> vector<64x64xf32>
    %cst_3 = arith.constant 0.369546473 : f32
    %10 = vector.broadcast %cst_3 : f32 to vector<64x64xf32>
    %11 = arith.mulf %10, %9 : vector<64x64xf32>
    %12 = arith.addf %8, %11 : vector<64x64xf32>
    %c63_i32 = arith.constant 63 : i32
    %13 = tpu.dynamic_rotate %1 by %c63_i32 dim 1 : vector<64x64xf32>, i32 -> vector<64x64xf32>
    %cst_4 = arith.constant 0.244460404 : f32
    %14 = vector.broadcast %cst_4 : f32 to vector<64x64xf32>
    %15 = arith.mulf %14, %13 : vector<64x64xf32>
    %16 = arith.addf %12, %15 : vector<64x64xf32>
    %c62_i32 = arith.constant 62 : i32
    %17 = tpu.dynamic_rotate %1 by %c62_i32 dim 1 : vector<64x64xf32>, i32 -> vector<64x64xf32>
    %cst_5 = arith.constant 0.0707663745 : f32
    %18 = vector.broadcast %cst_5 : f32 to vector<64x64xf32>
    %19 = arith.mulf %18, %17 : vector<64x64xf32>
    %20 = arith.addf %16, %19 : vector<64x64xf32>
    %c2_i32_6 = arith.constant 2 : i32
    %21 = tpu.dynamic_rotate %20 by %c2_i32_6 dim 0 : vector<64x64xf32>, i32 -> vector<64x64xf32>
    %cst_7 = arith.constant 0.0707663745 : f32
    %22 = vector.broadcast %cst_7 : f32 to vector<64x64xf32>
    %23 = arith.mulf %22, %21 : vector<64x64xf32>
    %c1_i32_8 = arith.constant 1 : i32
    %24 = tpu.dynamic_rotate %20 by %c1_i32_8 dim 0 : vector<64x64xf32>, i32 -> vector<64x64xf32>
    %cst_9 = arith.constant 0.244460404 : f32
    %25 = vector.broadcast %cst_9 : f32 to vector<64x64xf32>
    %26 = arith.mulf %25, %24 : vector<64x64xf32>
    %27 = arith.addf %23, %26 : vector<64x64xf32>
    %c0_i32_10 = arith.constant 0 : i32
    %28 = tpu.dynamic_rotate %20 by %c0_i32_10 dim 0 : vector<64x64xf32>, i32 -> vector<64x64xf32>
    %cst_11 = arith.constant 0.369546473 : f32
    %29 = vector.broadcast %cst_11 : f32 to vector<64x64xf32>
    %30 = arith.mulf %29, %28 : vector<64x64xf32>
    %31 = arith.addf %27, %30 : vector<64x64xf32>
    %c63_i32_12 = arith.constant 63 : i32
    %32 = tpu.dynamic_rotate %20 by %c63_i32_12 dim 0 : vector<64x64xf32>, i32 -> vector<64x64xf32>
    %cst_13 = arith.constant 0.244460404 : f32
    %33 = vector.broadcast %cst_13 : f32 to vector<64x64xf32>
    %34 = arith.mulf %33, %32 : vector<64x64xf32>
    %35 = arith.addf %31, %34 : vector<64x64xf32>
    %c62_i32_14 = arith.constant 62 : i32
    %36 = tpu.dynamic_rotate %20 by %c62_i32_14 dim 0 : vector<64x64xf32>, i32 -> vector<64x64xf32>
    %cst_15 = arith.constant 0.0707663745 : f32
    %37 = vector.broadcast %cst_15 : f32 to vector<64x64xf32>
    %38 = arith.mulf %37, %36 : vector<64x64xf32>
    %39 = arith.addf %35, %38 : vector<64x64xf32>
    %c5_i32 = arith.constant 5 : i32
    %40 = tpu.dynamic_rotate %39 by %c5_i32 dim 1 : vector<64x64xf32>, i32 -> vector<64x64xf32>
    %cst_16 = arith.constant 0.00881222915 : f32
    %41 = vector.broadcast %cst_16 : f32 to vector<64x64xf32>
    %42 = arith.mulf %41, %40 : vector<64x64xf32>
    %c4_i32 = arith.constant 4 : i32
    %43 = tpu.dynamic_rotate %39 by %c4_i32 dim 1 : vector<64x64xf32>, i32 -> vector<64x64xf32>
    %cst_17 = arith.constant 0.0271435771 : f32
    %44 = vector.broadcast %cst_17 : f32 to vector<64x64xf32>
    %45 = arith.mulf %44, %43 : vector<64x64xf32>
    %46 = arith.addf %42, %45 : vector<64x64xf32>
    %c3_i32 = arith.constant 3 : i32
    %47 = tpu.dynamic_rotate %39 by %c3_i32 dim 1 : vector<64x64xf32>, i32 -> vector<64x64xf32>
    %cst_18 = arith.constant 0.0651140586 : f32
    %48 = vector.broadcast %cst_18 : f32 to vector<64x64xf32>
    %49 = arith.mulf %48, %47 : vector<64x64xf32>
    %50 = arith.addf %46, %49 : vector<64x64xf32>
    %c2_i32_19 = arith.constant 2 : i32
    %51 = tpu.dynamic_rotate %39 by %c2_i32_19 dim 1 : vector<64x64xf32>, i32 -> vector<64x64xf32>
    %cst_20 = arith.constant 0.121649072 : f32
    %52 = vector.broadcast %cst_20 : f32 to vector<64x64xf32>
    %53 = arith.mulf %52, %51 : vector<64x64xf32>
    %54 = arith.addf %50, %53 : vector<64x64xf32>
    %c1_i32_21 = arith.constant 1 : i32
    %55 = tpu.dynamic_rotate %39 by %c1_i32_21 dim 1 : vector<64x64xf32>, i32 -> vector<64x64xf32>
    %cst_22 = arith.constant 0.176998362 : f32
    %56 = vector.broadcast %cst_22 : f32 to vector<64x64xf32>
    %57 = arith.mulf %56, %55 : vector<64x64xf32>
    %58 = arith.addf %54, %57 : vector<64x64xf32>
    %c0_i32_23 = arith.constant 0 : i32
    %59 = tpu.dynamic_rotate %39 by %c0_i32_23 dim 1 : vector<64x64xf32>, i32 -> vector<64x64xf32>
    %cst_24 = arith.constant 0.200565413 : f32
    %60 = vector.broadcast %cst_24 : f32 to vector<64x64xf32>
    %61 = arith.mulf %60, %59 : vector<64x64xf32>
    %62 = arith.addf %58, %61 : vector<64x64xf32>
    %c63_i32_25 = arith.constant 63 : i32
    %63 = tpu.dynamic_rotate %39 by %c63_i32_25 dim 1 : vector<64x64xf32>, i32 -> vector<64x64xf32>
    %cst_26 = arith.constant 0.176998362 : f32
    %64 = vector.broadcast %cst_26 : f32 to vector<64x64xf32>
    %65 = arith.mulf %64, %63 : vector<64x64xf32>
    %66 = arith.addf %62, %65 : vector<64x64xf32>
    %c62_i32_27 = arith.constant 62 : i32
    %67 = tpu.dynamic_rotate %39 by %c62_i32_27 dim 1 : vector<64x64xf32>, i32 -> vector<64x64xf32>
    %cst_28 = arith.constant 0.121649072 : f32
    %68 = vector.broadcast %cst_28 : f32 to vector<64x64xf32>
    %69 = arith.mulf %68, %67 : vector<64x64xf32>
    %70 = arith.addf %66, %69 : vector<64x64xf32>
    %c61_i32 = arith.constant 61 : i32
    %71 = tpu.dynamic_rotate %39 by %c61_i32 dim 1 : vector<64x64xf32>, i32 -> vector<64x64xf32>
    %cst_29 = arith.constant 0.0651140586 : f32
    %72 = vector.broadcast %cst_29 : f32 to vector<64x64xf32>
    %73 = arith.mulf %72, %71 : vector<64x64xf32>
    %74 = arith.addf %70, %73 : vector<64x64xf32>
    %c60_i32 = arith.constant 60 : i32
    %75 = tpu.dynamic_rotate %39 by %c60_i32 dim 1 : vector<64x64xf32>, i32 -> vector<64x64xf32>
    %cst_30 = arith.constant 0.0271435771 : f32
    %76 = vector.broadcast %cst_30 : f32 to vector<64x64xf32>
    %77 = arith.mulf %76, %75 : vector<64x64xf32>
    %78 = arith.addf %74, %77 : vector<64x64xf32>
    %c59_i32 = arith.constant 59 : i32
    %79 = tpu.dynamic_rotate %39 by %c59_i32 dim 1 : vector<64x64xf32>, i32 -> vector<64x64xf32>
    %cst_31 = arith.constant 0.00881222915 : f32
    %80 = vector.broadcast %cst_31 : f32 to vector<64x64xf32>
    %81 = arith.mulf %80, %79 : vector<64x64xf32>
    %82 = arith.addf %78, %81 : vector<64x64xf32>
    %c5_i32_32 = arith.constant 5 : i32
    %83 = tpu.dynamic_rotate %82 by %c5_i32_32 dim 0 : vector<64x64xf32>, i32 -> vector<64x64xf32>
    %cst_33 = arith.constant 0.00881222915 : f32
    %84 = vector.broadcast %cst_33 : f32 to vector<64x64xf32>
    %85 = arith.mulf %84, %83 : vector<64x64xf32>
    %c4_i32_34 = arith.constant 4 : i32
    %86 = tpu.dynamic_rotate %82 by %c4_i32_34 dim 0 : vector<64x64xf32>, i32 -> vector<64x64xf32>
    %cst_35 = arith.constant 0.0271435771 : f32
    %87 = vector.broadcast %cst_35 : f32 to vector<64x64xf32>
    %88 = arith.mulf %87, %86 : vector<64x64xf32>
    %89 = arith.addf %85, %88 : vector<64x64xf32>
    %c3_i32_36 = arith.constant 3 : i32
    %90 = tpu.dynamic_rotate %82 by %c3_i32_36 dim 0 : vector<64x64xf32>, i32 -> vector<64x64xf32>
    %cst_37 = arith.constant 0.0651140586 : f32
    %91 = vector.broadcast %cst_37 : f32 to vector<64x64xf32>
    %92 = arith.mulf %91, %90 : vector<64x64xf32>
    %93 = arith.addf %89, %92 : vector<64x64xf32>
    %c2_i32_38 = arith.constant 2 : i32
    %94 = tpu.dynamic_rotate %82 by %c2_i32_38 dim 0 : vector<64x64xf32>, i32 -> vector<64x64xf32>
    %cst_39 = arith.constant 0.121649072 : f32
    %95 = vector.broadcast %cst_39 : f32 to vector<64x64xf32>
    %96 = arith.mulf %95, %94 : vector<64x64xf32>
    %97 = arith.addf %93, %96 : vector<64x64xf32>
    %c1_i32_40 = arith.constant 1 : i32
    %98 = tpu.dynamic_rotate %82 by %c1_i32_40 dim 0 : vector<64x64xf32>, i32 -> vector<64x64xf32>
    %cst_41 = arith.constant 0.176998362 : f32
    %99 = vector.broadcast %cst_41 : f32 to vector<64x64xf32>
    %100 = arith.mulf %99, %98 : vector<64x64xf32>
    %101 = arith.addf %97, %100 : vector<64x64xf32>
    %c0_i32_42 = arith.constant 0 : i32
    %102 = tpu.dynamic_rotate %82 by %c0_i32_42 dim 0 : vector<64x64xf32>, i32 -> vector<64x64xf32>
    %cst_43 = arith.constant 0.200565413 : f32
    %103 = vector.broadcast %cst_43 : f32 to vector<64x64xf32>
    %104 = arith.mulf %103, %102 : vector<64x64xf32>
    %105 = arith.addf %101, %104 : vector<64x64xf32>
    %c63_i32_44 = arith.constant 63 : i32
    %106 = tpu.dynamic_rotate %82 by %c63_i32_44 dim 0 : vector<64x64xf32>, i32 -> vector<64x64xf32>
    %cst_45 = arith.constant 0.176998362 : f32
    %107 = vector.broadcast %cst_45 : f32 to vector<64x64xf32>
    %108 = arith.mulf %107, %106 : vector<64x64xf32>
    %109 = arith.addf %105, %108 : vector<64x64xf32>
    %c62_i32_46 = arith.constant 62 : i32
    %110 = tpu.dynamic_rotate %82 by %c62_i32_46 dim 0 : vector<64x64xf32>, i32 -> vector<64x64xf32>
    %cst_47 = arith.constant 0.121649072 : f32
    %111 = vector.broadcast %cst_47 : f32 to vector<64x64xf32>
    %112 = arith.mulf %111, %110 : vector<64x64xf32>
    %113 = arith.addf %109, %112 : vector<64x64xf32>
    %c61_i32_48 = arith.constant 61 : i32
    %114 = tpu.dynamic_rotate %82 by %c61_i32_48 dim 0 : vector<64x64xf32>, i32 -> vector<64x64xf32>
    %cst_49 = arith.constant 0.0651140586 : f32
    %115 = vector.broadcast %cst_49 : f32 to vector<64x64xf32>
    %116 = arith.mulf %115, %114 : vector<64x64xf32>
    %117 = arith.addf %113, %116 : vector<64x64xf32>
    %c60_i32_50 = arith.constant 60 : i32
    %118 = tpu.dynamic_rotate %82 by %c60_i32_50 dim 0 : vector<64x64xf32>, i32 -> vector<64x64xf32>
    %cst_51 = arith.constant 0.0271435771 : f32
    %119 = vector.broadcast %cst_51 : f32 to vector<64x64xf32>
    %120 = arith.mulf %119, %118 : vector<64x64xf32>
    %121 = arith.addf %117, %120 : vector<64x64xf32>
    %c59_i32_52 = arith.constant 59 : i32
    %122 = tpu.dynamic_rotate %82 by %c59_i32_52 dim 0 : vector<64x64xf32>, i32 -> vector<64x64xf32>
    %cst_53 = arith.constant 0.00881222915 : f32
    %123 = vector.broadcast %cst_53 : f32 to vector<64x64xf32>
    %124 = arith.mulf %123, %122 : vector<64x64xf32>
    %125 = arith.addf %121, %124 : vector<64x64xf32>
    %126 = tpu.iota {dimensions = array<i32: 0>} : vector<64x64xi32>
    %127 = tpu.iota {dimensions = array<i32: 1>} : vector<64x64xi32>
    %c16_i32 = arith.constant 16 : i32
    %128 = vector.broadcast %c16_i32 : i32 to vector<64x64xi32>
    %129 = arith.cmpi sge, %126, %128 : vector<64x64xi32>
    %c48_i32 = arith.constant 48 : i32
    %130 = vector.broadcast %c48_i32 : i32 to vector<64x64xi32>
    %131 = arith.cmpi slt, %126, %130 : vector<64x64xi32>
    %132 = arith.andi %129, %131 : vector<64x64xi1>
    %c16_i32_54 = arith.constant 16 : i32
    %133 = vector.broadcast %c16_i32_54 : i32 to vector<64x64xi32>
    %134 = arith.cmpi sge, %127, %133 : vector<64x64xi32>
    %135 = arith.andi %132, %134 : vector<64x64xi1>
    %c48_i32_55 = arith.constant 48 : i32
    %136 = vector.broadcast %c48_i32_55 : i32 to vector<64x64xi32>
    %137 = arith.cmpi slt, %127, %136 : vector<64x64xi32>
    %138 = arith.andi %135, %137 : vector<64x64xi1>
    %139 = arith.extui %138 : vector<64x64xi1> to vector<64x64xi32>
    %140 = arith.sitofp %139 : vector<64x64xi32> to vector<64x64xf32>
    %cst_56 = arith.constant 1.000000e+00 : f32
    %141 = vector.broadcast %cst_56 : f32 to vector<64x64xf32>
    %142 = arith.subf %141, %140 : vector<64x64xf32>
    %cst_57 = arith.constant 2.000000e+00 : f32
    %143 = vector.broadcast %cst_57 : f32 to vector<64x64xf32>
    %144 = arith.subf %125, %143 : vector<64x64xf32>
    %145 = arith.cmpf ogt, %39, %144 : vector<64x64xf32>
    %cst_58 = arith.constant 1.000000e+00 : f32
    %cst_59 = arith.constant 0.000000e+00 : f32
    %146 = vector.broadcast %cst_58 : f32 to vector<64x64xf32>
    %147 = vector.broadcast %cst_59 : f32 to vector<64x64xf32>
    %148 = arith.select %145, %146, %147 : vector<64x64xi1>, vector<64x64xf32>
    %149 = arith.mulf %148, %140 : vector<64x64xf32>
    %c1_i32_60 = arith.constant 1 : i32
    %150 = tpu.dynamic_rotate %149 by %c1_i32_60 dim 0 : vector<64x64xf32>, i32 -> vector<64x64xf32>
    %151 = arith.maximumf %149, %150 : vector<64x64xf32>
    %c63_i32_61 = arith.constant 63 : i32
    %152 = tpu.dynamic_rotate %149 by %c63_i32_61 dim 0 : vector<64x64xf32>, i32 -> vector<64x64xf32>
    %153 = arith.maximumf %151, %152 : vector<64x64xf32>
    %c1_i32_62 = arith.constant 1 : i32
    %154 = tpu.dynamic_rotate %149 by %c1_i32_62 dim 1 : vector<64x64xf32>, i32 -> vector<64x64xf32>
    %155 = arith.maximumf %153, %154 : vector<64x64xf32>
    %c63_i32_63 = arith.constant 63 : i32
    %156 = tpu.dynamic_rotate %149 by %c63_i32_63 dim 1 : vector<64x64xf32>, i32 -> vector<64x64xf32>
    %157 = arith.maximumf %155, %156 : vector<64x64xf32>
    %158 = arith.maximumf %157, %142 : vector<64x64xf32>
    %c1_i32_64 = arith.constant 1 : i32
    %159 = tpu.dynamic_rotate %158 by %c1_i32_64 dim 0 : vector<64x64xf32>, i32 -> vector<64x64xf32>
    %160 = arith.minimumf %158, %159 : vector<64x64xf32>
    %c63_i32_65 = arith.constant 63 : i32
    %161 = tpu.dynamic_rotate %158 by %c63_i32_65 dim 0 : vector<64x64xf32>, i32 -> vector<64x64xf32>
    %162 = arith.minimumf %160, %161 : vector<64x64xf32>
    %c1_i32_66 = arith.constant 1 : i32
    %163 = tpu.dynamic_rotate %158 by %c1_i32_66 dim 1 : vector<64x64xf32>, i32 -> vector<64x64xf32>
    %164 = arith.minimumf %162, %163 : vector<64x64xf32>
    %c63_i32_67 = arith.constant 63 : i32
    %165 = tpu.dynamic_rotate %158 by %c63_i32_67 dim 1 : vector<64x64xf32>, i32 -> vector<64x64xf32>
    %166 = arith.minimumf %164, %165 : vector<64x64xf32>
    %167 = arith.mulf %166, %140 : vector<64x64xf32>
    %168 = arith.maximumf %167, %142 : vector<64x64xf32>
    %c1_i32_68 = arith.constant 1 : i32
    %169 = tpu.dynamic_rotate %168 by %c1_i32_68 dim 0 : vector<64x64xf32>, i32 -> vector<64x64xf32>
    %170 = arith.minimumf %168, %169 : vector<64x64xf32>
    %c63_i32_69 = arith.constant 63 : i32
    %171 = tpu.dynamic_rotate %168 by %c63_i32_69 dim 0 : vector<64x64xf32>, i32 -> vector<64x64xf32>
    %172 = arith.minimumf %170, %171 : vector<64x64xf32>
    %c1_i32_70 = arith.constant 1 : i32
    %173 = tpu.dynamic_rotate %168 by %c1_i32_70 dim 1 : vector<64x64xf32>, i32 -> vector<64x64xf32>
    %174 = arith.minimumf %172, %173 : vector<64x64xf32>
    %c63_i32_71 = arith.constant 63 : i32
    %175 = tpu.dynamic_rotate %168 by %c63_i32_71 dim 1 : vector<64x64xf32>, i32 -> vector<64x64xf32>
    %176 = arith.minimumf %174, %175 : vector<64x64xf32>
    %177 = arith.mulf %176, %140 : vector<64x64xf32>
    %c1_i32_72 = arith.constant 1 : i32
    %178 = tpu.dynamic_rotate %177 by %c1_i32_72 dim 0 : vector<64x64xf32>, i32 -> vector<64x64xf32>
    %179 = arith.maximumf %177, %178 : vector<64x64xf32>
    %c63_i32_73 = arith.constant 63 : i32
    %180 = tpu.dynamic_rotate %177 by %c63_i32_73 dim 0 : vector<64x64xf32>, i32 -> vector<64x64xf32>
    %181 = arith.maximumf %179, %180 : vector<64x64xf32>
    %c1_i32_74 = arith.constant 1 : i32
    %182 = tpu.dynamic_rotate %177 by %c1_i32_74 dim 1 : vector<64x64xf32>, i32 -> vector<64x64xf32>
    %183 = arith.maximumf %181, %182 : vector<64x64xf32>
    %c63_i32_75 = arith.constant 63 : i32
    %184 = tpu.dynamic_rotate %177 by %c63_i32_75 dim 1 : vector<64x64xf32>, i32 -> vector<64x64xf32>
    %185 = arith.maximumf %183, %184 : vector<64x64xf32>
    %186 = arith.mulf %185, %140 : vector<64x64xf32>
    %187 = vector.extract_strided_slice %186 {offsets = [16, 16], sizes = [32, 32], strides = [1, 1]} : vector<64x64xf32> to vector<32x32xf32>
    %c0_76 = arith.constant 0 : index
    %c0_77 = arith.constant 0 : index
    %c0_78 = arith.constant 0 : index
    %188 = vector.load %arg2[%c0_76, %c0_77, %c0_78] : memref<1x32x32xf32, #tpu.memory_space<vmem>>, vector<1x32x32xf32>
    %189 = vector.shape_cast %188 : vector<1x32x32xf32> to vector<32x32xf32>
    %190 = vector.shape_cast %187 : vector<32x32xf32> to vector<1x32x32xf32>
    tpu.vector_store %arg2[%c0_76, %c0_77, %c0_78], %190 {strides = array<i32>} : memref<1x32x32xf32, #tpu.memory_space<vmem>>, vector<1x32x32xf32>,
    return
  }
  func.func @transform_0(%arg0: i32) -> (i32, i32, i32) {
    %c0_i32 = arith.constant 0 : i32
    %c0_i32_0 = arith.constant 0 : i32
    %c0_i32_1 = arith.constant 0 : i32
    return %arg0, %c0_i32, %c0_i32_0 : i32, i32, i32
  }
  func.func @transform_1(%arg0: i32) -> (i32, i32, i32) {
    %c0_i32 = arith.constant 0 : i32
    %c0_i32_0 = arith.constant 0 : i32
    %c0_i32_1 = arith.constant 0 : i32
    return %arg0, %c0_i32, %c0_i32_0 : i32, i32, i32
  }
}

</mosaic_0001>

<bundles_post_ra>
// kernel: tpu_custom_call.1
= control target key start
LH: loop header
LB: loop body
LE: loop exit
PB: predicated region body
PF: predicated region fallthrough
CT: control target
= control target key end

     0   :  { %6 = vsyncpa [#allocation3], 0  ;;  %s3961_s0 = inlined_call_operand.hbm [shape: f32[2,64,64], index: 0, kind: input, shape index: {}]   ;;  %s3962_s1 = inlined_call_operand.hbm [shape: f32[2,32,32], index: 1, kind: output, shape index: {}]  }
   0x1   :  { %8 = vsyncpa [#allocation3 + $0x1], 0 }
   0x2   :  { %9 = vsyncpa [#allocation4], 0 }
   0x3   :  { %11 = vsyncpa [#allocation4 + $0x1], 0  ;;  %s2340_s6 = smov 0   ;;  %s2342_s7 = smov 0  }
   0x4   :  { %s2344_s8 = smov 0   ;;  %s2346_s9 = smov 0  }
   0x5 LB: > { %s2361_s10 = sadd.s32 4294967295, %s2304_s9   ;;  %s2112_s11 = sadd.s32 4294967294, %s2304_s9   ;;  %s2304_s9 = sphi %s2346_s9, %s4037_s9   ;;  %s2300_s8 = sphi %s2344_s8, %s4036_s8   ;;  %s2296_s7 = sphi %s2342_s7, %s4035_s7   ;;  %s2292_s6 = sphi %s2340_s6, %s4034_s6  }
   0x6   : > { %s2365_s12 = sadd.s32 1, %s2304_s9   ;;  %s24_s13 = sadd.s32 1, %s2300_s8 }
   0x7   : > { %s21_s14 = ssub.s32 %s2304_s9, %s2365_s12  ;;  %p31_p0 = scmp.ne.s32.totalorder %s2300_s8, %s2296_s7 }
   0x8   : > { %p22_p1 = scmp.eq.s32.totalorder %s21_s14, 0  ;;  %p32_p2 = scmp.eq.s32.totalorder %s2304_s9, 0 }
   0x9   : > { %p37_p3 = scmp.ne.s32.totalorder %s2296_s7, %s2292_s6  ;;  %p38_p4 = scmp.eq.s32.totalorder %s2361_s10, 0 }
   0xa   : > { %s2377_s15 = scalar_select %p22_p1, %s2300_s8, %s24_s13  }
   0xb   : > { %p2379_p5 = por %p32_p2, %p31_p0  ;;  %p2383_p6 = por %p38_p4, %p37_p3 }
   0xc   : > { %p61_p7 = scmp.eq.s32.totalorder %s2361_s10, 1  ;;  %p67_p8 = scmp.eq.s32.totalorder %s2112_s11, 1 }
   0xd   : > { %p2152_p10 = scmp.lt.s32.totalorder %s2304_s9, 2  ;;  %s87_s20 = sand.u32 1, %s2300_s8  }
   0xe   : > { %p2390_p11 = por %p61_p7, %p31_p0  ;;  %p2394_p12 = por %p67_p8, %p37_p3 }
   0xf   : > { %s2138_s21 = sshll.u32 %s2304_s9, 10  ;;  %s2115_s22 = sshll.u32 %s87_s20, 6 }
  0x10   : > { %s3991_s18 = scalar_select %p2390_p11, 1, 0 }
  0x11   : > { %s3992_s19 = scalar_select %p2394_p12, 1, 0 }
  0x12   : > { %s2403_s25 = scalar_lea.hbm %s3961_s0, %s2138_s21  ;;  %s91_s26 = scalar_lea.vmem [#allocation2], %s2115_s22 }
  0x13   : > { %s98_s27 = sshll.u32 %s91_s26, 4  ;;  %p2407_p13 = pnand %p2152_p10, %p2379_p5  ;;  %s2411_s27 = int_to_ptr.vmem [resolvable:$true] %s98_s27 }
  0x14   : > { %s2413_s29 = scalar_lea.sflag [#allocation3], %s87_s20  ;;  %s2208_s30 = scalar_lea.hbm %s2403_s25, 1024 }
  0x15   : > { %p2209_p0 = scmp.ne.s32.totalorder %s2403_s25, %s2208_s30  ;;  %p2210_p1 = pneg %p2407_p13 }
  0x16   : > { %s2213_s4 = scalar_lea.hbm %s3961_s0, 2048  ;;  %p2214_p4 = scmp.lt.u32.totalorder %s2403_s25, %s3961_s0 }
  0x17   : > { %p2211_p2 = pnand %p2210_p1, %p2209_p0  ;;  %p2215_p5 = scmp.lt.u32.totalorder %s2213_s4, %s2208_s30 }
  0x18   : > { %p2217_p8 = scmp.lt.u32.totalorder %s2208_s30, %s2403_s25 }
  0x19   : > { %p2212_p3 = pneg %p2211_p2  ;;  %p2216_p7 = por %p2215_p5, %p2214_p4 }
  0x1b   : > { %p2218_p10 = por %p2217_p8, %p2216_p7 }
  0x1d   : > { %p2219_p9 = pnand %p2218_p10, %p2212_p3 }
  0x1f   : > { %2222 = shalt.err (!%p2219_p9)
}
  0x20   : > { %s2223_s13 = scalar_lea.vmem %s2411_s27, 1024  ;;  %s2306_s14 = smov [#allocation2]  }
  0x21   : > { %p2224_p0 = scmp.ne.s32.totalorder %s2411_s27, %s2223_s13  ;;  %s2228_s16 = sshll.u32 %s2306_s14, 4  ;;  %s2229_s16 = int_to_ptr.vmem [resolvable:$false] %s2228_s16 }
  0x22   : > { %s2230_s20 = scalar_lea.vmem %s2229_s16, 2048  ;;  %p2231_p11 = scmp.lt.s32.totalorder %s2411_s27, %s2229_s16 }
  0x23   : > { %p2226_p2 = pnand %p2224_p0, %p2210_p1  ;;  %p2232_p4 = scmp.lt.s32.totalorder %s2230_s20, %s2223_s13 }
  0x25   : > { %p2227_p12 = pneg %p2226_p2  ;;  %p2233_p5 = por %p2232_p4, %p2231_p11 }
  0x27   : > { %p2234_p7 = pnand %p2233_p5, %p2227_p12 }
  0x29   : > { %2237 = shalt.err (!%p2234_p7)
}
  0x2a   : > { %s2307_s21 = smov 128   ;;  %s2308_s22 = smov 8  }
  0x2b   : > { %2147 = dma.hbm_to_vmem [thread:$0]  (!%p2407_p13), %s2403_s25, 1024, %s2411_s27, %s2413_s29, %s2307_s21, %s2307_s21, %s2308_s22  }
  0x2c   : > { %p2118_p9 = scmp.ge.s32.totalorder %s2304_s9, 1  ;;  %p106_p1 = scmp.lt.s32.totalorder %s2304_s9, 3 }
  0x2e   : > { %p107_p3 = pnand %p2118_p9, %p106_p1 }
  0x30   : > { %110 = sbr.rel (%p107_p3) target bundleno = 2781 (0xadd), region = 24 }
  0x37   : > { %s2444_s23 = sand.u32 1, %s2296_s7  }
  0x38   : > { %s2119_s24 = sshll.u32 %s2444_s23, 6  ;;  %s113_s26 = scalar_lea.sflag [#allocation3], %s2444_s23 }
  0x39   : > { %s116_s30 = scalar_lea.vmem [#allocation2], %s2119_s24 }
  0x3a   : > { %2283 = dma.done.wait (%p2383_p6), %s113_s26, 1024  }
  0x3b   : > { %2285 = vsyncadd (%p2383_p6), %s113_s26, 4294966272  ;;  %v135_v0 = vld [vmem:[%s116_s30] sm:$0xff]  ;;  %v137_v1 = vld [vmem:[%s116_s30 + $0x10] sm:$0xff]  ;;  %s2309_s25 = smov 64   ;;  %vm143_vm0 = vcmask 1048064   ;;  %s2310_s17 = smov 127  }
  0x3c   : > { %144 = vrot.lane.b32.xlu0 %v135_v0, %s2309_s25  ;;  %150 = vrot.lane.b32.xlu1 %v137_v1, %s2309_s25  ;;  %v136_v2 = vld [vmem:[%s116_s30 + $0x8] sm:$0xff]  ;;  %v138_v3 = vld [vmem:[%s116_s30 + $0x18] sm:$0xff]  ;;  %s2311_s27 = smov 126   ;;  %s2312_s28 = smov 61  }
  0x3d   : > { %v139_v4 = vld [vmem:[%s116_s30 + $0x20] sm:$0xff]  ;;  %v140_v5 = vld [vmem:[%s116_s30 + $0x28] sm:$0xff]  ;;  %v2458_v6 = vld [vmem:[%s116_s30 + $0x30] sm:$0xff]  ;;  %s2313_s29 = smov 60   ;;  %s2314_s2 = smov 66  }
  0x3e   : > { %v2460_v7 = vld [vmem:[%s116_s30 + $0x38] sm:$0xff]  ;;  %s2315_s3 = smov 125   ;;  %s2316_s4 = smov 124  }
  0x3f   : > { %s2317_s5 = smov 123   ;;  %s2318_s11 = smov 58  }
  0x40   : > { %147 = vrot.lane.b32.xlu0 %v136_v2, %s2309_s25  ;;  %153 = vrot.lane.b32.xlu1 %v138_v3, %s2309_s25  ;;  %s2319_s13 = smov 57   ;;  %s2320_s14 = smov 56  }
  0x41   : > { %s2321_s16 = smov 55   ;;  %s2322_s20 = smov 54  }
  0x42   : > { %s2323_s21 = smov 69   ;;  %s2325_s22 = smov 65  }
  0x43   : > { %s2326_s24 = smov 112   ;;  %s2120_s26 = sshll.u32 %s2444_s23, 5 }
  0x44   : > { %156 = vrot.lane.b32.xlu0 %v139_v4, %s2309_s25  ;;  %159 = vrot.lane.b32.xlu1 %v140_v5, %s2309_s25  ;;  %s134_s30 = scalar_lea.vmem [#allocation5], %s2120_s26  ;;  %p4031_p11 = scmp.ne.s32.totalorder %s3991_s18, 0 }
  0x48   : > { %162 = vrot.lane.b32.xlu0 %v2458_v6, %s2309_s25  ;;  %165 = vrot.lane.b32.xlu1 %v2460_v7, %s2309_s25 }
  0xae   : > { %v145_v8 = vpop.permute.xlu0 %144  ;;  %v151_v9 = vpop.permute.xlu1 %150 }
  0xaf   : > { %v146_v10 = vsel %vm143_vm0, %v145_v8, %v135_v0  ;;  %v152_v11 = vsel %vm143_vm0, %v151_v9, %v137_v1 }
  0xb0   : > { %168 = vrot.lane.b32.xlu0 %v146_v10, %s2309_s25 }
  0xb2   : > { %v148_v12 = vpop.permute.xlu0 %147  ;;  %v154_v13 = vpop.permute.xlu1 %153 }
  0xb3   : > { %v149_v14 = vsel %vm143_vm0, %v148_v12, %v136_v2  ;;  %v155_v15 = vsel %vm143_vm0, %v154_v13, %v138_v3 }
  0xb4   : > { %172 = vrot.lane.b32.xlu0 %v152_v11, %s2309_s25  ;;  %170 = vrot.lane.b32.xlu1 %v149_v14, %s2309_s25 }
  0xb6   : > { %v157_v16 = vpop.permute.xlu0 %156  ;;  %v160_v17 = vpop.permute.xlu1 %159 }
  0xb7   : > { %v158_v18 = vsel %vm143_vm0, %v157_v16, %v139_v4  ;;  %v161_v19 = vsel %vm143_vm0, %v160_v17, %v140_v5 }
  0xb8   : > { %174 = vrot.lane.b32.xlu1 %v155_v15, %s2309_s25  ;;  %176 = vrot.lane.b32.xlu0 %v158_v18, %s2309_s25 }
  0xba   : > { %v163_v20 = vpop.permute.xlu0 %162  ;;  %v166_v21 = vpop.permute.xlu1 %165 }
  0xbb   : > { %v164_v22 = vsel %vm143_vm0, %v163_v20, %v2458_v6  ;;  %v167_v23 = vsel %vm143_vm0, %v166_v21, %v2460_v7 }
  0xbc   : > { %178 = vrot.lane.b32.xlu1 %v161_v19, %s2309_s25  ;;  %180 = vrot.lane.b32.xlu0 %v164_v22, %s2309_s25 }
  0xc0   : > { %182 = vrot.lane.b32.xlu1 %v167_v23, %s2309_s25 }
 0x122   : > { %v169_v24 = vpop.permute.xlu0 %168 }
 0x123   : > { %v184_v25 = vsel %vm143_vm0, %v169_v24, %v135_v0 }
 0x124   : > { %v200_v26 = vmul.f32 0.2444604, %v184_v25  ;;  %v248_v42 = vmul.f32 0.36954647, %v184_v25  ;;  %v192_v52 = vmul.f32 0.070766374, %v184_v25 }
 0x126   : > { %v171_v27 = vpop.permute.xlu1 %170  ;;  %216 = vrot.lane.b32.xlu0 %v200_v26, %s2310_s17  ;;  %v173_v28 = vpop.permute.xlu0 %172 }
 0x127   : > { %v185_v29 = vsel %vm143_vm0, %v171_v27, %v136_v2  ;;  %v186_v30 = vsel %vm143_vm0, %v173_v28, %v137_v1 }
 0x128   : > { %v201_v31 = vmul.f32 0.2444604, %v185_v29  ;;  %v202_v32 = vmul.f32 0.2444604, %v186_v30  ;;  %v249_v43 = vmul.f32 0.36954647, %v185_v29 }
 0x129   : > { %v250_v44 = vmul.f32 0.36954647, %v186_v30  ;;  %v193_v53 = vmul.f32 0.070766374, %v185_v29  ;;  %v194_v54 = vmul.f32 0.070766374, %v186_v30 }
 0x12a   : > { %218 = vrot.lane.b32.xlu1 %v201_v31, %s2310_s17  ;;  %v175_v33 = vpop.permute.xlu1 %174  ;;  %220 = vrot.lane.b32.xlu0 %v202_v32, %s2310_s17  ;;  %v177_v34 = vpop.permute.xlu0 %176 }
 0x12b   : > { %v187_v35 = vsel %vm143_vm0, %v175_v33, %v138_v3  ;;  %v188_v36 = vsel %vm143_vm0, %v177_v34, %v139_v4 }
 0x12c   : > { %v203_v37 = vmul.f32 0.2444604, %v187_v35  ;;  %v204_v38 = vmul.f32 0.2444604, %v188_v36  ;;  %v251_v47 = vmul.f32 0.36954647, %v187_v35 }
 0x12d   : > { %v252_v48 = vmul.f32 0.36954647, %v188_v36  ;;  %v195_v55 = vmul.f32 0.070766374, %v187_v35  ;;  %v196_v56 = vmul.f32 0.070766374, %v188_v36 }
 0x12e   : > { %222 = vrot.lane.b32.xlu1 %v203_v37, %s2310_s17  ;;  %v179_v39 = vpop.permute.xlu1 %178  ;;  %224 = vrot.lane.b32.xlu0 %v204_v38, %s2310_s17  ;;  %v181_v45 = vpop.permute.xlu0 %180 }
 0x12f   : > { %v189_v40 = vsel %vm143_vm0, %v179_v39, %v140_v5  ;;  %v190_v46 = vsel %vm143_vm0, %v181_v45, %v2458_v6 }
 0x130   : > { %v205_v41 = vmul.f32 0.2444604, %v189_v40  ;;  %v206_v49 = vmul.f32 0.2444604, %v190_v46  ;;  %v253_v50 = vmul.f32 0.36954647, %v189_v40 }
 0x131   : > { %v254_v51 = vmul.f32 0.36954647, %v190_v46  ;;  %v197_v59 = vmul.f32 0.070766374, %v189_v40  ;;  %v198_v61 = vmul.f32 0.070766374, %v190_v46 }
 0x132   : > { %226 = vrot.lane.b32.xlu1 %v205_v41, %s2310_s17  ;;  %264 = vrot.lane.b32.xlu0 %v248_v42, %s2311_s27  ;;  %v183_v57 = vpop.permute.xlu1 %182 }
 0x133   : > { %v191_v58 = vsel %vm143_vm0, %v183_v57, %v2460_v7 }
 0x134   : > { %v207_v60 = vmul.f32 0.2444604, %v191_v58  ;;  %v255_v62 = vmul.f32 0.36954647, %v191_v58  ;;  %v2518_v63 = vmul.f32 0.070766374, %v191_v58 }
 0x136   : > { %266 = vrot.lane.b32.xlu1 %v249_v43, %s2311_s27  ;;  %268 = vrot.lane.b32.xlu0 %v250_v44, %s2311_s27 }
 0x13a   : > { %270 = vrot.lane.b32.xlu1 %v251_v47, %s2311_s27  ;;  %272 = vrot.lane.b32.xlu0 %v252_v48, %s2311_s27 }
 0x13e   : > { %274 = vrot.lane.b32.xlu1 %v253_v50, %s2311_s27  ;;  %228 = vrot.lane.b32.xlu0 %v206_v49, %s2310_s17 }
 0x142   : > { %296 = vrot.lane.b32.xlu1 %v200_v26, %s2312_s28  ;;  %298 = vrot.lane.b32.xlu0 %v201_v31, %s2312_s28 }
 0x146   : > { %300 = vrot.lane.b32.xlu1 %v202_v32, %s2312_s28  ;;  %302 = vrot.lane.b32.xlu0 %v203_v37, %s2312_s28 }
 0x14a   : > { %304 = vrot.lane.b32.xlu1 %v204_v38, %s2312_s28  ;;  %306 = vrot.lane.b32.xlu0 %v205_v41, %s2312_s28 }
 0x14e   : > { %276 = vrot.lane.b32.xlu1 %v254_v51, %s2311_s27  ;;  %336 = vrot.lane.b32.xlu0 %v192_v52, %s2313_s29 }
 0x152   : > { %338 = vrot.lane.b32.xlu1 %v193_v53, %s2313_s29  ;;  %340 = vrot.lane.b32.xlu0 %v194_v54, %s2313_s29 }
 0x156   : > { %342 = vrot.lane.b32.xlu1 %v195_v55, %s2313_s29  ;;  %344 = vrot.lane.b32.xlu0 %v196_v56, %s2313_s29 }
 0x15a   : > { %346 = vrot.lane.b32.xlu1 %v197_v59, %s2313_s29  ;;  %308 = vrot.lane.b32.xlu0 %v206_v49, %s2312_s28 }
 0x15e   : > { %230 = vrot.lane.b32.xlu0 %v207_v60, %s2310_s17  ;;  %348 = vrot.lane.b32.xlu1 %v198_v61, %s2313_s29 }
 0x162   : > { %278 = vrot.lane.b32.xlu1 %v255_v62, %s2311_s27  ;;  %310 = vrot.lane.b32.xlu0 %v207_v60, %s2312_s28 }
 0x166   : > { %350 = vrot.lane.b32.xlu1 %v2518_v63, %s2313_s29 }
 0x198   : > { %v217_v0 = vpop.permute.xlu0 %216 }
 0x199   : > { %v240_v17 = vadd.f32 %v217_v0, %v192_v52 }
 0x19c   : > { %v219_v1 = vpop.permute.xlu1 %218  ;;  %v221_v2 = vpop.permute.xlu0 %220 }
 0x19d   : > { %v241_v21 = vadd.f32 %v219_v1, %v193_v53  ;;  %v242_v22 = vadd.f32 %v221_v2, %v194_v54  ;;  %v3964_v1 = vlaneseq }
 0x19f   : > { %v2531_v2 = vshrl.u32 %v3964_v1, 7 }
 0x1a0   : > { %v223_v3 = vpop.permute.xlu1 %222  ;;  %v225_v4 = vpop.permute.xlu0 %224 }
 0x1a1   : > { %v243_v29 = vadd.f32 %v223_v3, %v195_v55  ;;  %v244_v30 = vadd.f32 %v225_v4, %v196_v56  ;;  %3994 = vst [vmem:[#allocation8_spill] sm:$0xff] %v2531_v2  ;;  %vm410_vm1 = vcmp.lt.s32.totalorder %v2531_v2, 2  ;;  %vm435_vm2 = vcmp.lt.s32.totalorder %v2531_v2, 1 }
 0x1a2   : > { %vm484_vm3 = vcmp.lt.s32.totalorder %v2531_v2, 7  ;;  %vm517_vm4 = vcmp.lt.s32.totalorder %v2531_v2, 6 }
 0x1a4   : > { %v227_v5 = vpop.permute.xlu1 %226  ;;  %v265_v6 = vpop.permute.xlu0 %264 }
 0x1a5   : > { %v288_v20 = vadd.f32 %v265_v6, %v240_v17  ;;  %v245_v39 = vadd.f32 %v227_v5, %v197_v59 }
 0x1a8   : > { %v267_v7 = vpop.permute.xlu1 %266  ;;  %v269_v8 = vpop.permute.xlu0 %268 }
 0x1a9   : > { %v289_v26 = vadd.f32 %v267_v7, %v241_v21  ;;  %v290_v27 = vadd.f32 %v269_v8, %v242_v22 }
 0x1ac   : > { %v271_v9 = vpop.permute.xlu1 %270  ;;  %v273_v10 = vpop.permute.xlu0 %272 }
 0x1ad   : > { %v291_v35 = vadd.f32 %v271_v9, %v243_v29  ;;  %v292_v36 = vadd.f32 %v273_v10, %v244_v30 }
 0x1b0   : > { %v275_v11 = vpop.permute.xlu1 %274  ;;  %v229_v12 = vpop.permute.xlu0 %228 }
 0x1b1   : > { %v293_v44 = vadd.f32 %v275_v11, %v245_v39  ;;  %v246_v47 = vadd.f32 %v229_v12, %v198_v61 }
 0x1b4   : > { %v297_v13 = vpop.permute.xlu1 %296  ;;  %v299_v14 = vpop.permute.xlu0 %298 }
 0x1b5   : > { %v320_v23 = vadd.f32 %v297_v13, %v288_v20  ;;  %v321_v31 = vadd.f32 %v299_v14, %v289_v26 }
 0x1b8   : > { %v301_v15 = vpop.permute.xlu1 %300  ;;  %v303_v16 = vpop.permute.xlu0 %302 }
 0x1b9   : > { %v322_v32 = vadd.f32 %v301_v15, %v290_v27  ;;  %v323_v40 = vadd.f32 %v303_v16, %v291_v35 }
 0x1bc   : > { %v305_v18 = vpop.permute.xlu1 %304  ;;  %v307_v19 = vpop.permute.xlu0 %306 }
 0x1bd   : > { %v324_v41 = vadd.f32 %v305_v18, %v292_v36  ;;  %v325_v48 = vadd.f32 %v307_v19, %v293_v44 }
 0x1c0   : > { %v277_v24 = vpop.permute.xlu1 %276  ;;  %v337_v25 = vpop.permute.xlu0 %336 }
 0x1c1   : > { %v360_v28 = vadd.f32 %v337_v25, %v320_v23  ;;  %v294_v51 = vadd.f32 %v277_v24, %v246_v47 }
 0x1c3   : > { %376 = vrot.lane.b32.xlu0 %v360_v28, %s2314_s2 }
 0x1c4   : > { %v339_v33 = vpop.permute.xlu1 %338  ;;  %v341_v34 = vpop.permute.xlu0 %340 }
 0x1c5   : > { %v361_v37 = vadd.f32 %v339_v33, %v321_v31  ;;  %v362_v38 = vadd.f32 %v341_v34, %v322_v32 }
 0x1c7   : > { %378 = vrot.lane.b32.xlu1 %v361_v37, %s2314_s2  ;;  %380 = vrot.lane.b32.xlu0 %v362_v38, %s2314_s2 }
 0x1c8   : > { %v343_v42 = vpop.permute.xlu1 %342  ;;  %v345_v43 = vpop.permute.xlu0 %344 }
 0x1c9   : > { %v363_v45 = vadd.f32 %v343_v42, %v323_v40  ;;  %v364_v46 = vadd.f32 %v345_v43, %v324_v41 }
 0x1cb   : > { %382 = vrot.lane.b32.xlu1 %v363_v45, %s2314_s2  ;;  %384 = vrot.lane.b32.xlu0 %v364_v46, %s2314_s2 }
 0x1cc   : > { %v347_v49 = vpop.permute.xlu1 %346  ;;  %v309_v50 = vpop.permute.xlu0 %308 }
 0x1cd   : > { %v365_v52 = vadd.f32 %v347_v49, %v325_v48  ;;  %v326_v53 = vadd.f32 %v309_v50, %v294_v51 }
 0x1cf   : > { %386 = vrot.lane.b32.xlu1 %v365_v52, %s2314_s2 }
 0x1d0   : > { %v349_v54 = vpop.permute.xlu1 %348  ;;  %v231_v55 = vpop.permute.xlu0 %230 }
 0x1d1   : > { %v366_v56 = vadd.f32 %v349_v54, %v326_v53  ;;  %v247_v57 = vadd.f32 %v231_v55, %v2518_v63 }
 0x1d3   : > { %388 = vrot.lane.b32.xlu0 %v366_v56, %s2314_s2 }
 0x1d4   : > { %v279_v58 = vpop.permute.xlu1 %278  ;;  %v311_v59 = vpop.permute.xlu0 %310 }
 0x1d5   : > { %v295_v60 = vadd.f32 %v279_v58, %v247_v57 }
 0x1d7   : > { %v327_v61 = vadd.f32 %v311_v59, %v295_v60 }
 0x1d8   : > { %v351_v62 = vpop.permute.xlu1 %350 }
 0x1d9   : > { %v367_v0 = vadd.f32 %v351_v62, %v327_v61 }
 0x1db   : > { %390 = vrot.lane.b32.xlu1 %v367_v0, %s2314_s2  ;;  %s2026_s2 = scalar_lea.sflag [#allocation4], %s2444_s23 }
 0x235   : > { %v2533_v3 = vpop.permute.xlu0 %376 }
 0x236   : > { %v400_v63 = vrot.slane %v2533_v3, 6  ;;  %v427_v4 = vrot.slane %v2533_v3, 7  ;;  %v476_v7 = vrot.slane %v2533_v3, 1 }
 0x239   : > { %v2539_v5 = vpop.permute.xlu1 %378  ;;  %v381_v6 = vpop.permute.xlu0 %380 }
 0x23a   : > { %v401_v8 = vrot.slane %v2539_v5, 6  ;;  %v428_v9 = vrot.slane %v2539_v5, 7  ;;  %v461_v10 = vmul.f32 0.36954647, %v2539_v5  ;;  %v477_v11 = vrot.slane %v2539_v5, 1 }
 0x23b   : > { %v510_v12 = vrot.slane %v2539_v5, 2  ;;  %v402_v13 = vrot.slane %v381_v6, 6  ;;  %v429_v14 = vrot.slane %v381_v6, 7  ;;  %v462_v15 = vmul.f32 0.36954647, %v381_v6 }
 0x23c   : > { %v478_v16 = vrot.slane %v381_v6, 1  ;;  %v417_v17 = vsel %vm410_vm1, %v400_v63, %v401_v8  ;;  %v442_v18 = vsel %vm435_vm2, %v427_v4, %v428_v9  ;;  %v511_v19 = vrot.slane %v381_v6, 2 }
 0x23d   : > { %v383_v20 = vpop.permute.xlu1 %382  ;;  %v2557_v21 = vpop.permute.xlu0 %384  ;;  %v420_v22 = vmul.f32 0.070766374, %v417_v17  ;;  %v445_v23 = vmul.f32 0.2444604, %v442_v18  ;;  %v416_v24 = vsel %vm410_vm1, %v401_v8, %v402_v13  ;;  %v441_v28 = vsel %vm435_vm2, %v428_v9, %v429_v14 }
 0x23e   : > { %v403_v25 = vrot.slane %v383_v20, 6  ;;  %v430_v26 = vrot.slane %v383_v20, 7  ;;  %v463_v27 = vmul.f32 0.36954647, %v383_v20  ;;  %v479_v29 = vrot.slane %v383_v20, 1 }
 0x23f   : > { %v512_v30 = vrot.slane %v383_v20, 2  ;;  %v404_v31 = vrot.slane %v2557_v21, 6  ;;  %v431_v32 = vrot.slane %v2557_v21, 7  ;;  %v2566_v33 = vmul.f32 0.36954647, %v2557_v21 }
 0x240   : > { %v480_v34 = vrot.slane %v2557_v21, 1  ;;  %v453_v35 = vadd.f32 %v445_v23, %v420_v22  ;;  %v490_v36 = vsel %vm484_vm3, %v477_v11, %v478_v16  ;;  %v513_v37 = vrot.slane %v2557_v21, 2 }
 0x241   : > { %v2574_v38 = vpop.permute.xlu1 %386  ;;  %v523_v39 = vsel %vm517_vm4, %v510_v12, %v511_v19  ;;  %v421_v40 = vmul.f32 0.070766374, %v416_v24  ;;  %v446_v41 = vmul.f32 0.2444604, %v441_v28  ;;  %v494_v45 = vmul.f32 0.2444604, %v490_v36 }
 0x242   : > { %v405_v42 = vrot.slane %v2574_v38, 6  ;;  %v432_v43 = vrot.slane %v2574_v38, 7  ;;  %v2583_v44 = vmul.f32 0.36954647, %v2574_v38  ;;  %v481_v46 = vrot.slane %v2574_v38, 1 }
 0x243   : > { %v514_v47 = vrot.slane %v2574_v38, 2  ;;  %v469_v48 = vadd.f32 %v461_v10, %v453_v35  ;;  %v454_v49 = vadd.f32 %v446_v41, %v421_v40  ;;  %v527_v50 = vmul.f32 0.070766374, %v523_v39 }
 0x244   : > { %v489_v51 = vsel %vm484_vm3, %v478_v16, %v479_v29  ;;  %v522_v52 = vsel %vm517_vm4, %v511_v19, %v512_v30  ;;  %v415_v53 = vsel %vm410_vm1, %v402_v13, %v403_v25  ;;  %v440_v58 = vsel %vm435_vm2, %v429_v14, %v430_v26 }
 0x245   : > { %v389_v54 = vpop.permute.xlu0 %388  ;;  %v502_v55 = vadd.f32 %v494_v45, %v469_v48  ;;  %v470_v56 = vadd.f32 %v462_v15, %v454_v49  ;;  %v495_v57 = vmul.f32 0.2444604, %v489_v51  ;;  %v528_v62 = vmul.f32 0.070766374, %v522_v52 }
 0x246   : > { %v406_v59 = vrot.slane %v389_v54, 6  ;;  %v433_v60 = vrot.slane %v389_v54, 7  ;;  %v2595_v61 = vmul.f32 0.36954647, %v389_v54  ;;  %v482_v0 = vrot.slane %v389_v54, 1 }
 0x247   : > { %v2597_v6 = vadd.f32 %v527_v50, %v502_v55  ;;  %v503_v8 = vadd.f32 %v495_v57, %v470_v56  ;;  %v422_v9 = vmul.f32 0.070766374, %v415_v53  ;;  %v447_v10 = vmul.f32 0.2444604, %v440_v58 }
 0x248   : > { %v488_v13 = vsel %vm484_vm3, %v479_v29, %v480_v34  ;;  %v521_v15 = vsel %vm517_vm4, %v512_v30, %v513_v37  ;;  %v414_v14 = vsel %vm410_vm1, %v403_v25, %v404_v31  ;;  %v515_v16 = vrot.slane %v389_v54, 2 }
 0x249   : > { %3995 = vst [vmem:[#allocation9_spill] sm:$0xff] %v2597_v6  ;;  %545 = vrot.lane.b32.xlu0 %v2597_v6, %s2309_s25  ;;  %v2607_v17 = vadd.f32 %v528_v62, %v503_v8  ;;  %v496_v18 = vmul.f32 0.2444604, %v488_v13  ;;  %v423_v19 = vmul.f32 0.070766374, %v414_v14  ;;  %v455_v20 = vadd.f32 %v447_v10, %v422_v9 }
 0x24a   : > { %v439_v21 = vsel %vm435_vm2, %v430_v26, %v431_v32  ;;  %v487_v22 = vsel %vm484_vm3, %v480_v34, %v481_v46  ;;  %v520_v23 = vsel %vm517_vm4, %v513_v37, %v514_v47  ;;  %v529_v24 = vmul.f32 0.070766374, %v521_v15 }
 0x24b   : > { %3996 = vst [vmem:[#allocation10_spill] sm:$0xff] %v2607_v17  ;;  %548 = vrot.lane.b32.xlu1 %v2607_v17, %s2309_s25  ;;  %v448_v25 = vmul.f32 0.2444604, %v439_v21  ;;  %v497_v28 = vmul.f32 0.2444604, %v487_v22  ;;  %v413_v29 = vsel %vm410_vm1, %v404_v31, %v405_v42  ;;  %v471_v30 = vadd.f32 %v463_v27, %v455_v20 }
 0x24c   : > { %v424_v35 = vmul.f32 0.070766374, %v413_v29  ;;  %v438_v26 = vsel %vm435_vm2, %v431_v32, %v432_v43  ;;  %v486_v34 = vsel %vm484_vm3, %v481_v46, %v482_v0  ;;  %v530_v37 = vmul.f32 0.070766374, %v520_v23 }
 0x24d   : > { %v456_v36 = vadd.f32 %v448_v25, %v423_v19  ;;  %v391_v39 = vpop.permute.xlu1 %390  ;;  %v449_v40 = vmul.f32 0.2444604, %v438_v26  ;;  %v519_v41 = vsel %vm517_vm4, %v514_v47, %v515_v16  ;;  %v504_v45 = vadd.f32 %v496_v18, %v471_v30 }
 0x24e   : > { %v407_v48 = vrot.slane %v391_v39, 6  ;;  %v434_v31 = vrot.slane %v391_v39, 7  ;;  %v498_v27 = vmul.f32 0.2444604, %v486_v34  ;;  %v483_v50 = vrot.slane %v391_v39, 1 }
 0x24f   : > { %v472_v49 = vadd.f32 %v2566_v33, %v456_v36  ;;  %v516_v51 = vrot.slane %v391_v39, 2  ;;  %v457_v52 = vadd.f32 %v449_v40, %v424_v35  ;;  %v2630_v32 = vadd.f32 %v529_v24, %v504_v45 }
 0x250   : > { %v531_v53 = vmul.f32 0.070766374, %v519_v41  ;;  %v412_v46 = vsel %vm410_vm1, %v405_v42, %v406_v59  ;;  %v437_v47 = vsel %vm435_vm2, %v432_v43, %v433_v60  ;;  %v485_v57 = vsel %vm484_vm3, %v482_v0, %v483_v50 }
 0x251   : > { %3997 = vst [vmem:[#allocation11_spill] sm:$0xff] %v2630_v32  ;;  %v505_v54 = vadd.f32 %v497_v28, %v472_v49  ;;  %v473_v55 = vadd.f32 %v2583_v44, %v457_v52  ;;  %v425_v33 = vmul.f32 0.070766374, %v412_v46  ;;  %v450_v56 = vmul.f32 0.2444604, %v437_v47  ;;  %551 = vrot.lane.b32.xlu0 %v2630_v32, %s2309_s25 }
 0x252   : > { %v518_v58 = vsel %vm517_vm4, %v515_v16, %v516_v51  ;;  %v411_v38 = vsel %vm410_vm1, %v406_v59, %v407_v48  ;;  %v436_v42 = vsel %vm435_vm2, %v433_v60, %v434_v31  ;;  %v499_v8 = vmul.f32 0.2444604, %v485_v57 }
 0x253   : > { %v2651_v43 = vadd.f32 %v530_v37, %v505_v54  ;;  %v506_v44 = vadd.f32 %v498_v27, %v473_v55  ;;  %v458_v62 = vadd.f32 %v450_v56, %v425_v33  ;;  %v509_v9 = vrot.slane %v2533_v3, 2 }
 0x254   : > { %v426_v10 = vmul.f32 0.070766374, %v411_v38  ;;  %v451_v13 = vmul.f32 0.2444604, %v436_v42  ;;  %v467_v0 = vmul.f32 0.36954647, %v391_v39  ;;  %v492_v60 = vsel %vm484_vm3, %v483_v50, %v476_v7 }
 0x255   : > { %3998 = vst [vmem:[#allocation12_spill] sm:$0xff] %v2651_v43  ;;  %554 = vrot.lane.b32.xlu1 %v2651_v43, %s2309_s25  ;;  %v2656_v15 = vadd.f32 %v531_v53, %v506_v44  ;;  %v474_v59 = vadd.f32 %v2595_v61, %v458_v62  ;;  %v532_v14 = vmul.f32 0.070766374, %v518_v58  ;;  %v418_v18 = vsel %vm410_vm1, %v407_v48, %v400_v63 }
 0x256   : > { %v459_v16 = vadd.f32 %v451_v13, %v426_v10  ;;  %v443_v19 = vsel %vm435_vm2, %v434_v31, %v427_v4  ;;  %v525_v20 = vsel %vm517_vm4, %v516_v51, %v509_v9  ;;  %v419_v21 = vmul.f32 0.070766374, %v418_v18 }
 0x257   : > { %3999 = vst [vmem:[#allocation13_spill] sm:$0xff] %v2656_v15  ;;  %557 = vrot.lane.b32.xlu0 %v2656_v15, %s2309_s25  ;;  %v507_v61 = vadd.f32 %v499_v8, %v474_v59  ;;  %v444_v22 = vmul.f32 0.2444604, %v443_v19  ;;  %v500_v24 = vmul.f32 0.2444604, %v492_v60  ;;  %v491_v63 = vsel %vm484_vm3, %v476_v7, %v477_v11 }
 0x258   : > { %v475_v23 = vadd.f32 %v467_v0, %v459_v16  ;;  %v460_v4 = vmul.f32 0.36954647, %v2533_v3  ;;  %v533_v30 = vmul.f32 0.070766374, %v525_v20  ;;  %v524_v35 = vsel %vm517_vm4, %v509_v9, %v510_v12 }
 0x259   : > { %v2682_v25 = vadd.f32 %v532_v14, %v507_v61  ;;  %v452_v28 = vadd.f32 %v444_v22, %v419_v21  ;;  %v493_v34 = vmul.f32 0.2444604, %v491_v63  ;;  %v526_v11 = vmul.f32 0.070766374, %v524_v35 }
 0x25a   : > { %v508_v29 = vadd.f32 %v500_v24, %v475_v23 }
 0x25b   : > { %4000 = vst [vmem:[#allocation14_spill] sm:$0xff] %v2682_v25  ;;  %560 = vrot.lane.b32.xlu1 %v2682_v25, %s2309_s25  ;;  %v468_v26 = vadd.f32 %v460_v4, %v452_v28 }
 0x25c   : > { %v2690_v36 = vadd.f32 %v533_v30, %v508_v29 }
 0x25d   : > { %v501_v7 = vadd.f32 %v493_v34, %v468_v26 }
 0x25e   : > { %4001 = vst [vmem:[#allocation15_spill] sm:$0xff] %v2690_v36 }
 0x25f   : > { %v2692_v3 = vadd.f32 %v526_v11, %v501_v7 }
 0x261   : > { %4002 = vst [vmem:[#allocation16_spill] sm:$0xff] %v2692_v3 }
 0x2bb   : > { %v546_v37 = vpop.permute.xlu0 %545 }
 0x2bc   : > { %v547_v39 = vsel %vm143_vm0, %v546_v37, %v2597_v6 }
 0x2bd   : > { %v549_v40 = vpop.permute.xlu1 %548  ;;  %568 = vrot.lane.b32.xlu0 %v547_v39, %s2309_s25 }
 0x2be   : > { %v550_v5 = vsel %vm143_vm0, %v549_v40, %v2607_v17 }
 0x2bf   : > { %570 = vrot.lane.b32.xlu1 %v550_v5, %s2309_s25 }
 0x2c3   : > { %v552_v12 = vpop.permute.xlu0 %551 }
 0x2c4   : > { %v553_v41 = vsel %vm143_vm0, %v552_v12, %v2630_v32 }
 0x2c5   : > { %572 = vrot.lane.b32.xlu0 %v553_v41, %s2309_s25 }
 0x2c7   : > { %v555_v45 = vpop.permute.xlu1 %554 }
 0x2c8   : > { %v556_v48 = vsel %vm143_vm0, %v555_v45, %v2651_v43 }
 0x2c9   : > { %574 = vrot.lane.b32.xlu1 %v556_v48, %s2309_s25  ;;  %v558_v31 = vpop.permute.xlu0 %557 }
 0x2ca   : > { %v559_v27 = vsel %vm143_vm0, %v558_v31, %v2656_v15 }
 0x2cb   : > { %576 = vrot.lane.b32.xlu0 %v559_v27, %s2309_s25 }
 0x2cd   : > { %v561_v49 = vpop.permute.xlu1 %560 }
 0x2ce   : > { %v562_v50 = vsel %vm143_vm0, %v561_v49, %v2682_v25 }
 0x2cf   : > { %578 = vrot.lane.b32.xlu1 %v562_v50, %s2309_s25 }
 0x32f   : > { %v569_v51 = vpop.permute.xlu0 %568 }
 0x330   : > { %v2714_v52 = vsel %vm143_vm0, %v569_v51, %v2597_v6 }
 0x331   : > { %v571_v53 = vpop.permute.xlu1 %570  ;;  %v2717_v46 = vmul.f32 0.027143577, %v2714_v52  ;;  %v2756_v8 = vmul.f32 0.06511406, %v2714_v52  ;;  %v695_v59 = vmul.f32 0.12164907, %v2714_v52 }
 0x332   : > { %v2721_v47 = vsel %vm143_vm0, %v571_v53, %v2607_v17  ;;  %v743_v19 = vmul.f32 0.17699836, %v2714_v52  ;;  %v791_v23 = vmul.f32 0.20056541, %v2714_v52  ;;  %v591_v37 = vmul.f32 0.008812229, %v2714_v52 }
 0x333   : > { %v2724_v54 = vmul.f32 0.027143577, %v2721_v47  ;;  %616 = vrot.lane.b32.xlu0 %v2717_v46, %s2310_s17  ;;  %v648_v9 = vmul.f32 0.06511406, %v2721_v47  ;;  %v696_v60 = vmul.f32 0.12164907, %v2721_v47 }
 0x334   : > { %v744_v61 = vmul.f32 0.17699836, %v2721_v47  ;;  %v792_v24 = vmul.f32 0.20056541, %v2721_v47  ;;  %v592_v39 = vmul.f32 0.008812229, %v2721_v47 }
 0x335   : > { %618 = vrot.lane.b32.xlu1 %v2724_v54, %s2310_s17 }
 0x337   : > { %v573_v55 = vpop.permute.xlu0 %572 }
 0x338   : > { %v2732_v33 = vsel %vm143_vm0, %v573_v55, %v2630_v32 }
 0x339   : > { %v2735_v56 = vmul.f32 0.027143577, %v2732_v33  ;;  %v649_v10 = vmul.f32 0.06511406, %v2732_v33  ;;  %v697_v14 = vmul.f32 0.12164907, %v2732_v33 }
 0x33a   : > { %v745_v20 = vmul.f32 0.17699836, %v2732_v33  ;;  %v793_v4 = vmul.f32 0.20056541, %v2732_v33  ;;  %v593_v40 = vmul.f32 0.008812229, %v2732_v33 }
 0x33b   : > { %v575_v57 = vpop.permute.xlu1 %574  ;;  %620 = vrot.lane.b32.xlu0 %v2735_v56, %s2310_s17 }
 0x33c   : > { %v2739_v58 = vsel %vm143_vm0, %v575_v57, %v2651_v43 }
 0x33d   : > { %v2744_v38 = vmul.f32 0.027143577, %v2739_v58  ;;  %v577_v42 = vpop.permute.xlu0 %576  ;;  %v650_v13 = vmul.f32 0.06511406, %v2739_v58  ;;  %v698_v16 = vmul.f32 0.12164907, %v2739_v58 }
 0x33e   : > { %v2748_v44 = vsel %vm143_vm0, %v577_v42, %v2656_v15  ;;  %v746_v21 = vmul.f32 0.17699836, %v2739_v58  ;;  %v794_v28 = vmul.f32 0.20056541, %v2739_v58  ;;  %v2839_v5 = vmul.f32 0.008812229, %v2739_v58 }
 0x33f   : > { %622 = vrot.lane.b32.xlu1 %v2744_v38, %s2310_s17  ;;  %v2753_v62 = vmul.f32 0.027143577, %v2748_v44  ;;  %v651_v0 = vmul.f32 0.06511406, %v2748_v44  ;;  %v699_v18 = vmul.f32 0.12164907, %v2748_v44 }
 0x340   : > { %v747_v22 = vmul.f32 0.17699836, %v2748_v44  ;;  %v795_v30 = vmul.f32 0.20056541, %v2748_v44  ;;  %v2845_v12 = vmul.f32 0.008812229, %v2748_v44 }
 0x341   : > { %624 = vrot.lane.b32.xlu0 %v2753_v62, %s2310_s17  ;;  %v579_v63 = vpop.permute.xlu1 %578 }
 0x342   : > { %v588_v29 = vsel %vm143_vm0, %v579_v63, %v2682_v25 }
 0x343   : > { %664 = vrot.lane.b32.xlu1 %v2756_v8, %s2311_s27  ;;  %v604_v35 = vmul.f32 0.027143577, %v588_v29  ;;  %v652_v26 = vmul.f32 0.06511406, %v588_v29  ;;  %v700_v34 = vmul.f32 0.12164907, %v588_v29 }
 0x344   : > { %v748_v7 = vmul.f32 0.17699836, %v588_v29  ;;  %v796_v11 = vmul.f32 0.20056541, %v588_v29  ;;  %v2852_v48 = vmul.f32 0.008812229, %v588_v29 }
 0x345   : > { %666 = vrot.lane.b32.xlu0 %v648_v9, %s2311_s27 }
 0x346   : > { %4003 = vst [vmem:[#allocation17_spill] sm:$0xff] %v2852_v48 }
 0x347   : > { %668 = vrot.lane.b32.xlu1 %v649_v10, %s2311_s27 }
 0x349   : > { %670 = vrot.lane.b32.xlu0 %v650_v13, %s2311_s27 }
 0x34b   : > { %672 = vrot.lane.b32.xlu1 %v651_v0, %s2311_s27 }
 0x34d   : > { %712 = vrot.lane.b32.xlu0 %v695_v59, %s2315_s3 }
 0x34f   : > { %714 = vrot.lane.b32.xlu1 %v696_v60, %s2315_s3 }
 0x351   : > { %716 = vrot.lane.b32.xlu0 %v697_v14, %s2315_s3 }
 0x353   : > { %718 = vrot.lane.b32.xlu1 %v698_v16, %s2315_s3 }
 0x355   : > { %720 = vrot.lane.b32.xlu0 %v699_v18, %s2315_s3 }
 0x357   : > { %760 = vrot.lane.b32.xlu1 %v743_v19, %s2316_s4 }
 0x359   : > { %762 = vrot.lane.b32.xlu0 %v744_v61, %s2316_s4 }
 0x35b   : > { %764 = vrot.lane.b32.xlu1 %v745_v20, %s2316_s4 }
 0x35d   : > { %766 = vrot.lane.b32.xlu0 %v746_v21, %s2316_s4 }
 0x35f   : > { %768 = vrot.lane.b32.xlu1 %v747_v22, %s2316_s4 }
 0x361   : > { %808 = vrot.lane.b32.xlu0 %v791_v23, %s2317_s5 }
 0x363   : > { %810 = vrot.lane.b32.xlu1 %v792_v24, %s2317_s5 }
 0x365   : > { %812 = vrot.lane.b32.xlu0 %v793_v4, %s2317_s5 }
 0x367   : > { %814 = vrot.lane.b32.xlu1 %v794_v28, %s2317_s5 }
 0x369   : > { %816 = vrot.lane.b32.xlu0 %v795_v30, %s2317_s5 }
 0x36b   : > { %626 = vrot.lane.b32.xlu1 %v604_v35, %s2310_s17 }
 0x36d   : > { %840 = vrot.lane.b32.xlu0 %v743_v19, %s2318_s11 }
 0x36f   : > { %842 = vrot.lane.b32.xlu1 %v744_v61, %s2318_s11 }
 0x371   : > { %844 = vrot.lane.b32.xlu0 %v745_v20, %s2318_s11 }
 0x373   : > { %846 = vrot.lane.b32.xlu1 %v746_v21, %s2318_s11 }
 0x375   : > { %848 = vrot.lane.b32.xlu0 %v747_v22, %s2318_s11 }
 0x377   : > { %674 = vrot.lane.b32.xlu1 %v652_v26, %s2311_s27 }
 0x379   : > { %872 = vrot.lane.b32.xlu0 %v695_v59, %s2319_s13 }
 0x37b   : > { %874 = vrot.lane.b32.xlu1 %v696_v60, %s2319_s13 }
 0x37d   : > { %876 = vrot.lane.b32.xlu0 %v697_v14, %s2319_s13 }
 0x37f   : > { %878 = vrot.lane.b32.xlu1 %v698_v16, %s2319_s13 }
 0x381   : > { %880 = vrot.lane.b32.xlu0 %v699_v18, %s2319_s13 }
 0x383   : > { %722 = vrot.lane.b32.xlu1 %v700_v34, %s2315_s3 }
 0x385   : > { %904 = vrot.lane.b32.xlu0 %v2756_v8, %s2320_s14 }
 0x387   : > { %906 = vrot.lane.b32.xlu1 %v648_v9, %s2320_s14 }
 0x389   : > { %908 = vrot.lane.b32.xlu0 %v649_v10, %s2320_s14 }
 0x38b   : > { %910 = vrot.lane.b32.xlu1 %v650_v13, %s2320_s14 }
 0x38d   : > { %912 = vrot.lane.b32.xlu0 %v651_v0, %s2320_s14 }
 0x38f   : > { %770 = vrot.lane.b32.xlu1 %v748_v7, %s2316_s4 }
 0x391   : > { %936 = vrot.lane.b32.xlu0 %v2717_v46, %s2321_s16 }
 0x393   : > { %938 = vrot.lane.b32.xlu1 %v2724_v54, %s2321_s16 }
 0x395   : > { %940 = vrot.lane.b32.xlu0 %v2735_v56, %s2321_s16 }
 0x397   : > { %942 = vrot.lane.b32.xlu1 %v2744_v38, %s2321_s16 }
 0x399   : > { %944 = vrot.lane.b32.xlu0 %v2753_v62, %s2321_s16 }
 0x39b   : > { %818 = vrot.lane.b32.xlu1 %v796_v11, %s2317_s5 }
 0x39d   : > { %976 = vrot.lane.b32.xlu0 %v591_v37, %s2322_s20 }
 0x39f   : > { %978 = vrot.lane.b32.xlu1 %v592_v39, %s2322_s20 }
 0x3a1   : > { %980 = vrot.lane.b32.xlu0 %v593_v40, %s2322_s20 }
 0x3a3   : > { %982 = vrot.lane.b32.xlu1 %v2839_v5, %s2322_s20 }
 0x3a5   : > { %984 = vrot.lane.b32.xlu0 %v2845_v12, %s2322_s20  ;;  %v617_v41 = vpop.permute.xlu0 %616 }
 0x3a6   : > { %v639_v30 = vadd.f32 %v617_v41, %v591_v37 }
 0x3a7   : > { %850 = vrot.lane.b32.xlu1 %v748_v7, %s2318_s11  ;;  %v619_v45 = vpop.permute.xlu1 %618 }
 0x3a9   : > { %882 = vrot.lane.b32.xlu0 %v700_v34, %s2319_s13 }
 0x3ab   : > { %914 = vrot.lane.b32.xlu1 %v652_v26, %s2320_s14  ;;  %v640_v26 = vadd.f32 %v619_v45, %v592_v39 }
 0x3ad   : > { %946 = vrot.lane.b32.xlu0 %v604_v35, %s2321_s16  ;;  %v621_v31 = vpop.permute.xlu0 %620 }
 0x3ae   : > { %v641_v11 = vadd.f32 %v621_v31, %v593_v40 }
 0x3af   : > { %986 = vrot.lane.b32.xlu1 %v2852_v48, %s2322_s20 }
 0x3b1   : > { %v623_v27 = vpop.permute.xlu1 %622  ;;  %542 = vrot.lane.b32.xlu0 %v2692_v3, %s2309_s25 }
 0x3b2   : > { %v642_v15 = vadd.f32 %v623_v27, %v2839_v5 }
 0x3b3   : > { %563 = vrot.lane.b32.xlu1 %v2690_v36, %s2309_s25  ;;  %v625_v49 = vpop.permute.xlu0 %624 }
 0x3b4   : > { %v643_v2 = vadd.f32 %v625_v49, %v2845_v12 }
 0x3b5   : > { %v665_v50 = vpop.permute.xlu1 %664 }
 0x3b6   : > { %v687_v34 = vadd.f32 %v665_v50, %v639_v30 }
 0x3b7   : > { %v667_v51 = vpop.permute.xlu0 %666 }
 0x3b8   : > { %v688_v1 = vadd.f32 %v667_v51, %v640_v26 }
 0x3b9   : > { %v669_v52 = vpop.permute.xlu1 %668 }
 0x3ba   : > { %v689_v43 = vadd.f32 %v669_v52, %v641_v11  ;;  %v4007_v11 = vld [vmem:[#allocation16_spill] sm:$0xff] }
 0x3bb   : > { %v671_v53 = vpop.permute.xlu0 %670 }
 0x3bc   : > { %v690_v3 = vadd.f32 %v671_v53, %v642_v15 }
 0x3bd   : > { %v673_v46 = vpop.permute.xlu1 %672 }
 0x3be   : > { %v691_v41 = vadd.f32 %v673_v46, %v643_v2 }
 0x3bf   : > { %v713_v47 = vpop.permute.xlu0 %712 }
 0x3c0   : > { %v735_v6 = vadd.f32 %v713_v47, %v687_v34 }
 0x3c1   : > { %v715_v54 = vpop.permute.xlu1 %714 }
 0x3c2   : > { %v736_v32 = vadd.f32 %v715_v54, %v688_v1 }
 0x3c3   : > { %v717_v55 = vpop.permute.xlu0 %716 }
 0x3c5   : > { %v719_v33 = vpop.permute.xlu1 %718 }
 0x3c6   : > { %v738_v45 = vadd.f32 %v719_v33, %v690_v3 }
 0x3c7   : > { %v721_v56 = vpop.permute.xlu0 %720 }
 0x3c8   : > { %v739_v51 = vadd.f32 %v721_v56, %v691_v41 }
 0x3c9   : > { %v761_v57 = vpop.permute.xlu1 %760 }
 0x3ca   : > { %v783_v17 = vadd.f32 %v761_v57, %v735_v6 }
 0x3cb   : > { %v763_v58 = vpop.permute.xlu0 %762 }
 0x3cc   : > { %v784_v48 = vadd.f32 %v763_v58, %v736_v32 }
 0x3cd   : > { %v765_v38 = vpop.permute.xlu1 %764 }
 0x3cf   : > { %v767_v42 = vpop.permute.xlu0 %766 }
 0x3d0   : > { %v786_v30 = vadd.f32 %v767_v42, %v738_v45 }
 0x3d1   : > { %v769_v44 = vpop.permute.xlu1 %768 }
 0x3d2   : > { %v787_v6 = vadd.f32 %v769_v44, %v739_v51 }
 0x3d3   : > { %v809_v62 = vpop.permute.xlu0 %808 }
 0x3d4   : > { %v831_v37 = vadd.f32 %v809_v62, %v783_v17 }
 0x3d5   : > { %v811_v8 = vpop.permute.xlu1 %810 }
 0x3d6   : > { %v832_v40 = vadd.f32 %v811_v8, %v784_v48  ;;  %v4005_v48 = vld [vmem:[#allocation17_spill] sm:$0xff] }
 0x3d7   : > { %v813_v9 = vpop.permute.xlu0 %812 }
 0x3d9   : > { %v815_v10 = vpop.permute.xlu1 %814 }
 0x3da   : > { %v834_v12 = vadd.f32 %v815_v10, %v786_v30 }
 0x3db   : > { %v817_v13 = vpop.permute.xlu0 %816 }
 0x3dc   : > { %v835_v32 = vadd.f32 %v817_v13, %v787_v6 }
 0x3dd   : > { %v627_v0 = vpop.permute.xlu1 %626 }
 0x3de   : > { %v644_v54 = vadd.f32 %v627_v0, %v4005_v48 }
 0x3df   : > { %v841_v59 = vpop.permute.xlu0 %840 }
 0x3e0   : > { %v863_v31 = vadd.f32 %v841_v59, %v831_v37 }
 0x3e1   : > { %v843_v60 = vpop.permute.xlu1 %842 }
 0x3e2   : > { %v864_v27 = vadd.f32 %v843_v60, %v832_v40 }
 0x3e3   : > { %v845_v14 = vpop.permute.xlu0 %844 }
 0x3e5   : > { %v847_v16 = vpop.permute.xlu1 %846 }
 0x3e6   : > { %v866_v2 = vadd.f32 %v847_v16, %v834_v12 }
 0x3e7   : > { %v849_v18 = vpop.permute.xlu0 %848 }
 0x3e9   : > { %v675_v19 = vpop.permute.xlu1 %674 }
 0x3ea   : > { %v692_v42 = vadd.f32 %v675_v19, %v644_v54 }
 0x3eb   : > { %v873_v61 = vpop.permute.xlu0 %872 }
 0x3ec   : > { %v895_v1 = vadd.f32 %v873_v61, %v863_v31  ;;  %v4010_v31 = vld [vmem:[#allocation8_spill] sm:$0xff] }
 0x3ed   : > { %v875_v20 = vpop.permute.xlu1 %874  ;;  %vm1046_vm5 = vcmp.lt.s32.totalorder %v4010_v31, 5  ;;  %vm1071_vm6 = vcmp.lt.s32.totalorder %v4010_v31, 4  ;;  %vm1104_vm7 = vcmp.lt.s32.totalorder %v4010_v31, 3 }
 0x3ee   : > { %v896_v15 = vadd.f32 %v875_v20, %v864_v27 }
 0x3ef   : > { %v877_v21 = vpop.permute.xlu0 %876 }
 0x3f1   : > { %v879_v22 = vpop.permute.xlu1 %878 }
 0x3f2   : > { %v898_v56 = vadd.f32 %v879_v22, %v866_v2 }
 0x3f3   : > { %v881_v23 = vpop.permute.xlu0 %880 }
 0x3f5   : > { %v2861_v24 = vpop.permute.xlu1 %722 }
 0x3f6   : > { %4004 = vst [vmem:[#allocation18_spill] sm:$0xff] %v2861_v24  ;;  %v737_v24 = vadd.f32 %v717_v55, %v689_v43  ;;  %v867_v55 = vadd.f32 %v849_v18, %v835_v32 }
 0x3f7   : > { %v905_v63 = vpop.permute.xlu0 %904 }
 0x3f8   : > { %v785_v50 = vadd.f32 %v765_v38, %v737_v24  ;;  %v927_v43 = vadd.f32 %v905_v63, %v895_v1  ;;  %v899_v62 = vadd.f32 %v881_v23, %v867_v55 }
 0x3f9   : > { %v907_v4 = vpop.permute.xlu1 %906 }
 0x3fa   : > { %v833_v5 = vadd.f32 %v813_v9, %v785_v50  ;;  %v928_v3 = vadd.f32 %v907_v4, %v896_v15  ;;  %v4009_v50 = vlaneseq }
 0x3fb   : > { %v909_v28 = vpop.permute.xlu0 %908 }
 0x3fc   : > { %v865_v49 = vadd.f32 %v845_v14, %v833_v5  ;;  %v1321_v40 = vand.u32 127, %v4009_v50 }
 0x3fd   : > { %v911_v29 = vpop.permute.xlu1 %910  ;;  %v4006_v59 = vld [vmem:[#allocation18_spill] sm:$0xff] }
 0x3fe   : > { %v897_v53 = vadd.f32 %v877_v21, %v865_v49  ;;  %v930_v8 = vadd.f32 %v911_v29, %v898_v56  ;;  %vm1346_vm8 = vcmp.ge.s32.totalorder %v1321_v40, 16  ;;  %vm1355_vm9 = vcmp.lt.s32.totalorder %v1321_v40, 48 }
 0x3ff   : > { %v913_v35 = vpop.permute.xlu0 %912  ;;  %vm1358_vm10 = vmand %vm1346_vm8, %vm1355_vm9 }
 0x400   : > { %v929_v57 = vadd.f32 %v909_v28, %v897_v53  ;;  %v931_v60 = vadd.f32 %v913_v35, %v899_v62 }
 0x401   : > { %v771_v7 = vpop.permute.xlu1 %770 }
 0x403   : > { %v937_v25 = vpop.permute.xlu0 %936 }
 0x404   : > { %v959_v46 = vadd.f32 %v937_v25, %v927_v43  ;;  %v740_v25 = vadd.f32 %v4006_v59, %v692_v42 }
 0x405   : > { %v939_v36 = vpop.permute.xlu1 %938 }
 0x406   : > { %v960_v58 = vadd.f32 %v939_v36, %v928_v3  ;;  %v788_v36 = vadd.f32 %v771_v7, %v740_v25 }
 0x407   : > { %v941_v39 = vpop.permute.xlu0 %940 }
 0x408   : > { %v961_v9 = vadd.f32 %v941_v39, %v929_v57  ;;  %v4008_v39 = vld [vmem:[#allocation15_spill] sm:$0xff] }
 0x409   : > { %v943_v47 = vpop.permute.xlu1 %942 }
 0x40a   : > { %v962_v0 = vadd.f32 %v943_v47, %v930_v8 }
 0x40b   : > { %v945_v52 = vpop.permute.xlu0 %944 }
 0x40c   : > { %v963_v18 = vadd.f32 %v945_v52, %v931_v60 }
 0x40d   : > { %v819_v17 = vpop.permute.xlu1 %818 }
 0x40e   : > { %v836_v20 = vadd.f32 %v819_v17, %v788_v36 }
 0x40f   : > { %v977_v33 = vpop.permute.xlu0 %976 }
 0x410   : > { %v999_v38 = vadd.f32 %v977_v33, %v959_v46 }
 0x411   : > { %v979_v44 = vpop.permute.xlu1 %978 }
 0x412   : > { %v1000_v10 = vadd.f32 %v979_v44, %v960_v58  ;;  %1016 = vrot.lane.b32.xlu0 %v999_v38, %s2323_s21  ;;  %v3986_v58 = vmov 0.0  }
 0x413   : > { %v981_v13 = vpop.permute.xlu0 %980  ;;  %v2940_v38 = vsel %vm1358_vm10, 1.0, %v3986_v58 }
 0x414   : > { %1018 = vrot.lane.b32.xlu1 %v1000_v10, %s2323_s21  ;;  %v1001_v14 = vadd.f32 %v981_v13, %v961_v9 }
 0x415   : > { %v983_v16 = vpop.permute.xlu1 %982 }
 0x416   : > { %v1002_v19 = vadd.f32 %v983_v16, %v962_v0  ;;  %1020 = vrot.lane.b32.xlu0 %v1001_v14, %s2323_s21 }
 0x417   : > { %v985_v61 = vpop.permute.xlu0 %984 }
 0x418   : > { %1022 = vrot.lane.b32.xlu1 %v1002_v19, %s2323_s21  ;;  %v1003_v21 = vadd.f32 %v985_v61, %v963_v18 }
 0x419   : > { %v851_v22 = vpop.permute.xlu1 %850 }
 0x41a   : > { %v868_v23 = vadd.f32 %v851_v22, %v836_v20  ;;  %1024 = vrot.lane.b32.xlu0 %v1003_v21, %s2323_s21 }
 0x41b   : > { %v883_v24 = vpop.permute.xlu0 %882 }
 0x41c   : > { %v900_v63 = vadd.f32 %v883_v24, %v868_v23 }
 0x41d   : > { %v915_v4 = vpop.permute.xlu1 %914 }
 0x41e   : > { %v932_v28 = vadd.f32 %v915_v4, %v900_v63 }
 0x41f   : > { %v947_v29 = vpop.permute.xlu0 %946 }
 0x420   : > { %v964_v35 = vadd.f32 %v947_v29, %v932_v28 }
 0x421   : > { %v987_v26 = vpop.permute.xlu1 %986 }
 0x422   : > { %v1004_v34 = vadd.f32 %v987_v26, %v964_v35 }
 0x423   : > { %v543_v7 = vpop.permute.xlu0 %542 }
 0x424   : > { %v544_v37 = vsel %vm143_vm0, %v543_v7, %v4007_v11  ;;  %1026 = vrot.lane.b32.xlu1 %v1004_v34, %s2323_s21 }
 0x425   : > { %v564_v41 = vpop.permute.xlu1 %563  ;;  %566 = vrot.lane.b32.xlu0 %v544_v37, %s2309_s25 }
 0x426   : > { %v565_v45 = vsel %vm143_vm0, %v564_v41, %v4008_v39 }
 0x428   : > { %580 = vrot.lane.b32.xlu1 %v565_v45, %s2309_s25 }
 0x484   : > { %v2881_v51 = vpop.permute.xlu0 %1016 }
 0x485   : > { %v3985_v47 = vrot.slane %v2881_v51, 3  ;;  %v3984_v30 = vrot.slane %v2881_v51, 4  ;;  %v3983_v27 = vrot.slane %v2881_v51, 5  ;;  %v3982_v1 = vrot.slane %v2881_v51, 6 }
 0x486   : > { %v2887_v5 = vpop.permute.xlu1 %1018  ;;  %v3981_v17 = vrot.slane %v2881_v51, 7 }
 0x487   : > { %v1040_v6 = vrot.slane %v2887_v5, 3  ;;  %v1065_v52 = vrot.slane %v2887_v5, 4  ;;  %v1098_v12 = vrot.slane %v2887_v5, 5  ;;  %v1131_v49 = vrot.slane %v2887_v5, 6 }
 0x488   : > { %v1163_v15 = vrot.slane %v2887_v5, 7  ;;  %v2929_v55 = vpop.permute.xlu0 %1020  ;;  %v2932_v33 = vmul.f32 0.20056541, %v2887_v5  ;;  %v3979_v42 = vrot.slane %v2887_v5, 1  ;;  %v3978_v44 = vrot.slane %v2887_v5, 2 }
 0x489   : > { %v2902_v43 = vsel %vm1046_vm5, %v3985_v47, %v1040_v6  ;;  %v1077_v32 = vsel %vm1071_vm6, %v3984_v30, %v1065_v52  ;;  %v2920_v3 = vsel %vm1104_vm7, %v3983_v27, %v1098_v12  ;;  %v1142_v46 = vsel %vm410_vm1, %v3982_v1, %v1131_v49 }
 0x48a   : > { %v1057_v2 = vmul.f32 0.008812229, %v2902_v43  ;;  %v2912_v53 = vmul.f32 0.027143577, %v1077_v32  ;;  %v2926_v48 = vpop.permute.xlu1 %1022  ;;  %v1115_v56 = vmul.f32 0.06511406, %v2920_v3  ;;  %v1174_v57 = vsel %vm435_vm2, %v3981_v17, %v1163_v15 }
 0x48b   : > { %v1147_v62 = vmul.f32 0.12164907, %v1142_v46  ;;  %v1133_v8 = vrot.slane %v2926_v48, 6  ;;  %v1165_v10 = vrot.slane %v2926_v48, 7  ;;  %v1132_v13 = vrot.slane %v2929_v55, 6 }
 0x48c   : > { %v1090_v54 = vadd.f32 %v2912_v53, %v1057_v2  ;;  %v1164_v59 = vrot.slane %v2929_v55, 7  ;;  %v1179_v25 = vmul.f32 0.17699836, %v1174_v57  ;;  %v1042_v60 = vrot.slane %v2926_v48, 3  ;;  %v2968_v28 = vpop.permute.xlu0 %1024 }
 0x48d   : > { %v1213_v0 = vrot.slane %v2926_v48, 1  ;;  %v1212_v14 = vrot.slane %v2929_v55, 1  ;;  %v1067_v16 = vrot.slane %v2926_v48, 4  ;;  %v1245_v36 = vrot.slane %v2926_v48, 2 }
 0x48e   : > { %v1123_v9 = vadd.f32 %v1115_v56, %v1090_v54  ;;  %v1141_v18 = vsel %vm410_vm1, %v1131_v49, %v1132_v13  ;;  %v1244_v19 = vrot.slane %v2929_v55, 2  ;;  %v1100_v61 = vrot.slane %v2926_v48, 5 }
 0x48f   : > { %v2958_v20 = vmul.f32 0.20056541, %v2926_v48  ;;  %v1140_v21 = vsel %vm410_vm1, %v1132_v13, %v1133_v8  ;;  %v1173_v22 = vsel %vm435_vm2, %v1163_v15, %v1164_v59  ;;  %v1041_v24 = vrot.slane %v2929_v55, 3 }
 0x490   : > { %v1155_v23 = vadd.f32 %v1147_v62, %v1123_v9  ;;  %v1066_v63 = vrot.slane %v2929_v55, 4  ;;  %v1172_v4 = vsel %vm435_vm2, %v1164_v59, %v1165_v10  ;;  %v2970_v29 = vmul.f32 0.12164907, %v1141_v18 }
 0x491   : > { %v2973_v35 = vmul.f32 0.20056541, %v2929_v55  ;;  %v1220_v26 = vsel %vm484_vm3, %v1212_v14, %v1213_v0  ;;  %v1221_v34 = vsel %vm484_vm3, %v3979_v42, %v1212_v14  ;;  %v2981_v7 = vmul.f32 0.12164907, %v1140_v21 }
 0x492   : > { %v2983_v37 = vmul.f32 0.17699836, %v1173_v22  ;;  %v1252_v41 = vsel %vm517_vm4, %v1244_v19, %v1245_v36  ;;  %v1253_v45 = vsel %vm517_vm4, %v3978_v44, %v1244_v19  ;;  %v2991_v50 = vmul.f32 0.17699836, %v1172_v4 }
 0x493   : > { %v1134_v40 = vrot.slane %v2968_v28, 6  ;;  %v1166_v49 = vrot.slane %v2968_v28, 7  ;;  %v1214_v15 = vrot.slane %v2968_v28, 1  ;;  %v1099_v32 = vrot.slane %v2929_v55, 5 }
 0x494   : > { %v1227_v2 = vmul.f32 0.17699836, %v1221_v34  ;;  %v2997_v46 = vmul.f32 0.17699836, %v1220_v26  ;;  %v3988_v54 = vrot.slane %v2968_v28, 2  ;;  %v1187_v57 = vadd.f32 %v1179_v25, %v1155_v23 }
 0x495   : > { %v1259_v62 = vmul.f32 0.12164907, %v1253_v45  ;;  %v3002_v9 = vmul.f32 0.12164907, %v1252_v41  ;;  %v1043_v13 = vrot.slane %v2968_v28, 3  ;;  %v1068_v14 = vrot.slane %v2968_v28, 4 }
 0x496   : > { %v3000_v56 = vpop.permute.xlu1 %1026  ;;  %v1101_v18 = vrot.slane %v2968_v28, 5  ;;  %v1139_v55 = vsel %vm410_vm1, %v1133_v8, %v1134_v40  ;;  %v3010_v19 = vmul.f32 0.20056541, %v2968_v28  ;;  %v1171_v25 = vsel %vm435_vm2, %v1165_v10, %v1166_v49 }
 0x497   : > { %v567_v59 = vpop.permute.xlu0 %566  ;;  %v1219_v21 = vsel %vm484_vm3, %v1213_v0, %v1214_v15  ;;  %v1251_v22 = vsel %vm517_vm4, %v1245_v36, %v3988_v54  ;;  %v3980_v8 = vrot.slane %v3000_v56, 6  ;;  %v1044_v23 = vrot.slane %v3000_v56, 3 }
 0x498   : > { %v1069_v4 = vrot.slane %v3000_v56, 4  ;;  %v3030_v10 = vsel %vm143_vm0, %v567_v59, %v4007_v11  ;;  %v3032_v34 = vmul.f32 0.12164907, %v1139_v55  ;;  %v3040_v36 = vmul.f32 0.17699836, %v1171_v25 }
 0x499   : > { %v3035_v0 = vmul.f32 0.06511406, %v3030_v10  ;;  %v3038_v41 = vmul.f32 0.027143577, %v3030_v10  ;;  %v3042_v45 = vmul.f32 0.17699836, %v1219_v21  ;;  %v1138_v59 = vsel %vm410_vm1, %v1134_v40, %v3980_v8 }
 0x49a   : > { %v3044_v44 = vmul.f32 0.12164907, %v1251_v22  ;;  %v1167_v55 = vrot.slane %v3000_v56, 7  ;;  %v1215_v42 = vrot.slane %v3000_v56, 1  ;;  %v1051_v25 = vsel %vm1046_vm5, %v1040_v6, %v1041_v24 }
 0x49b   : > { %662 = vrot.lane.b32.xlu1 %v3035_v0, %s2311_s27  ;;  %614 = vrot.lane.b32.xlu0 %v3038_v41, %s2310_s17  ;;  %v1058_v21 = vmul.f32 0.008812229, %v1051_v25  ;;  %v1076_v40 = vsel %vm1071_vm6, %v1065_v52, %v1066_v63  ;;  %v1109_v22 = vsel %vm1104_vm7, %v1098_v12, %v1099_v32  ;;  %v1203_v8 = vadd.f32 %v2932_v33, %v1187_v57 }
 0x49c   : > { %v3070_v17 = vmul.f32 0.17699836, %v3030_v10  ;;  %v3073_v1 = vmul.f32 0.12164907, %v3030_v10  ;;  %v1083_v6 = vmul.f32 0.027143577, %v1076_v40  ;;  %v1050_v27 = vsel %vm1046_vm5, %v1041_v24, %v1042_v60 }
 0x49d   : > { %v1235_v30 = vadd.f32 %v1227_v2, %v1203_v8  ;;  %v1059_v47 = vmul.f32 0.008812229, %v1050_v27  ;;  %v1075_v12 = vsel %vm1071_vm6, %v1066_v63, %v1067_v16  ;;  %v1116_v57 = vmul.f32 0.06511406, %v1109_v22 }
 0x49e   : > { %v1091_v33 = vadd.f32 %v1083_v6, %v1058_v21  ;;  %v1084_v40 = vmul.f32 0.027143577, %v1075_v12  ;;  %v1108_v24 = vsel %vm1104_vm7, %v1099_v32, %v1100_v61  ;;  %v1275_v8 = vmul.f32 0.06511406, %v1051_v25 }
 0x49f   : > { %758 = vrot.lane.b32.xlu1 %v3070_v17, %s2316_s4  ;;  %710 = vrot.lane.b32.xlu0 %v3073_v1, %s2315_s3  ;;  %v1267_v2 = vadd.f32 %v1259_v62, %v1235_v30  ;;  %v1117_v58 = vmul.f32 0.06511406, %v1108_v24  ;;  %v1049_v63 = vsel %vm1046_vm5, %v1042_v60, %v1043_v13  ;;  %v1074_v12 = vsel %vm1071_vm6, %v1067_v16, %v1068_v14 }
 0x4a0   : > { %v1124_v54 = vadd.f32 %v1116_v57, %v1091_v33  ;;  %v1092_v52 = vadd.f32 %v1084_v40, %v1059_v47  ;;  %v1060_v21 = vmul.f32 0.008812229, %v1049_v63  ;;  %v1170_v30 = vsel %vm435_vm2, %v1166_v49, %v1167_v55 }
 0x4a1   : > { %v1283_v32 = vadd.f32 %v1275_v8, %v1267_v2  ;;  %v1085_v62 = vmul.f32 0.027143577, %v1074_v12  ;;  %v1107_v47 = vsel %vm1104_vm7, %v1100_v61, %v1101_v18  ;;  %v1299_v25 = vmul.f32 0.008812229, %v1109_v22 }
 0x4a2   : > { %v1156_v60 = vadd.f32 %v2970_v29, %v1124_v54  ;;  %v1125_v16 = vadd.f32 %v1117_v58, %v1092_v52  ;;  %v1118_v33 = vmul.f32 0.06511406, %v1107_v47  ;;  %v1048_v49 = vsel %vm1046_vm5, %v1043_v13, %v1044_v23 }
 0x4a3   : > { %v1291_v57 = vadd.f32 %v1283_v32, %v1083_v6  ;;  %v1093_v26 = vadd.f32 %v1085_v62, %v1060_v21  ;;  %v1073_v48 = vsel %vm1071_vm6, %v1068_v14, %v1069_v4  ;;  %v1061_v58 = vmul.f32 0.008812229, %v1048_v49 }
 0x4a4   : > { %v1188_v61 = vadd.f32 %v2983_v37, %v1156_v60  ;;  %v1157_v29 = vadd.f32 %v2981_v7, %v1125_v16  ;;  %v1086_v54 = vmul.f32 0.027143577, %v1073_v48  ;;  %v1218_v22 = vsel %vm484_vm3, %v1214_v15, %v1215_v42 }
 0x4a5   : > { %v1307_v6 = vadd.f32 %v1299_v25, %v1291_v57  ;;  %v1126_v13 = vadd.f32 %v1118_v33, %v1093_v26  ;;  %v4011_v52 = vrot.slane %v3000_v56, 5  ;;  %v1151_v21 = vmul.f32 0.12164907, %v1138_v59  ;;  %v4014_v33 = vld [vmem:[#allocation10_spill] sm:$0xff] }
 0x4a6   : > { %v1189_v7 = vadd.f32 %v2991_v50, %v1157_v29  ;;  %v1204_v14 = vadd.f32 %v2973_v35, %v1188_v61  ;;  %v1094_v2 = vadd.f32 %v1086_v54, %v1061_v58  ;;  %v1183_v12 = vmul.f32 0.17699836, %v1170_v30 }
 0x4a7   : > { %v1106_v37 = vsel %vm1104_vm7, %v1101_v18, %v4011_v52  ;;  %v2127_v32 = vadd.f32 -2.0, %v1307_v6  ;;  %v1158_v15 = vadd.f32 %v3032_v34, %v1126_v13  ;;  %v4012_v26 = vrot.slane %v3000_v56, 2 }
 0x4a8   : > { %v1119_v8 = vmul.f32 0.06511406, %v1106_v37  ;;  %v4013_v60 = vrot.slane %v2968_v28, 2  ;;  %v1236_v18 = vadd.f32 %v2997_v46, %v1204_v14  ;;  %v1205_v50 = vadd.f32 %v2958_v20, %v1189_v7 }
 0x4a9   : > { %v1230_v35 = vmul.f32 0.17699836, %v1218_v22  ;;  %vm1398_vm11 = vcmp.gt.f32.partialorder %v4014_v33, %v2127_v32  ;;  %v1276_v59 = vmul.f32 0.06511406, %v1050_v27  ;;  %v1190_v30 = vadd.f32 %v3040_v36, %v1158_v15 }
 0x4aa   : > { %v1250_v25 = vsel %vm517_vm4, %v4013_v60, %v4012_v26  ;;  %v1127_v16 = vadd.f32 %v1119_v8, %v1094_v2  ;;  %v4015_v57 = vmov 0.0   ;;  %v1268_v48 = vadd.f32 %v3002_v9, %v1236_v18 }
 0x4ab   : > { %v1406_v34 = vsel %vm1398_vm11, 1.0, %v4015_v57  ;;  %v1237_v28 = vadd.f32 %v3042_v45, %v1205_v50  ;;  %v1206_v46 = vadd.f32 %v3010_v19, %v1190_v30  ;;  %v1277_v22 = vmul.f32 0.06511406, %v1049_v63 }
 0x4ac   : > { %v1159_v61 = vadd.f32 %v1151_v21, %v1127_v16  ;;  %v3156_v29 = vmul.f32 %v2940_v38, %v1406_v34  ;;  %v1284_v20 = vadd.f32 %v1276_v59, %v1268_v48  ;;  %v1262_v27 = vmul.f32 0.12164907, %v1250_v25 }
 0x4ad   : > { %v1269_v58 = vadd.f32 %v3044_v44, %v1237_v28  ;;  %v1238_v36 = vadd.f32 %v1230_v35, %v1206_v46  ;;  %v1300_v13 = vmul.f32 0.008812229, %v1108_v24  ;;  %v1278_v7 = vmul.f32 0.06511406, %v1048_v49  ;;  %v4017_v24 = vld [vmem:[#allocation12_spill] sm:$0xff] }
 0x4ae   : > { %v3160_v6 = vadd.f32 %v1183_v12, %v1159_v61  ;;  %1474 = vrot.lane.b32.xlu0 %v3156_v29, %s2309_s25  ;;  %v1292_v9 = vadd.f32 %v1284_v20, %v1084_v40  ;;  %v1301_v8 = vmul.f32 0.008812229, %v1107_v47  ;;  %v1302_v63 = vmul.f32 0.008812229, %v1106_v37  ;;  %v4016_v12 = vld [vmem:[#allocation11_spill] sm:$0xff]  ;;  %v581_v37 = vpop.permute.xlu1 %580 }
 0x4af   : > { %v1285_v45 = vadd.f32 %v1277_v22, %v1269_v58  ;;  %v1270_v52 = vadd.f32 %v1262_v27, %v1238_v36  ;;  %v790_v50 = vmul.f32 0.20056541, %v3030_v10  ;;  %v589_v16 = vsel %vm143_vm0, %v581_v37, %v4008_v39 }
 0x4b0   : > { %v1308_v14 = vadd.f32 %v1300_v13, %v1292_v9  ;;  %v605_v35 = vmul.f32 0.027143577, %v589_v16  ;;  %v653_v33 = vmul.f32 0.06511406, %v589_v16  ;;  %v701_v59 = vmul.f32 0.12164907, %v589_v16 }
 0x4b1   : > { %v1293_v2 = vadd.f32 %v1285_v45, %v1085_v62  ;;  %v1286_v19 = vadd.f32 %v1278_v7, %v1270_v52  ;;  %v749_v30 = vmul.f32 0.17699836, %v589_v16  ;;  %v797_v34 = vmul.f32 0.20056541, %v589_v16 }
 0x4b2   : > { %v2128_v21 = vadd.f32 -2.0, %v1308_v14 }
 0x4b3   : > { %v1309_v32 = vadd.f32 %v1301_v8, %v1293_v2  ;;  %v1294_v44 = vadd.f32 %v1286_v19, %v1086_v54  ;;  %v4018_v54 = vld [vmem:[#allocation13_spill] sm:$0xff] }
 0x4b4   : > { %vm1399_vm12 = vcmp.gt.f32.partialorder %v4016_v12, %v2128_v21 }
 0x4b5   : > { %v2129_v15 = vadd.f32 -2.0, %v1309_v32  ;;  %v1407_v26 = vsel %vm1399_vm12, 1.0, %v4015_v57  ;;  %v1310_v60 = vadd.f32 %v1302_v63, %v1294_v44 }
 0x4b6   : > { %v3167_v40 = vmul.f32 %v2940_v38, %v1407_v26 }
 0x4b7   : > { %vm1400_vm13 = vcmp.gt.f32.partialorder %v4017_v24, %v2129_v15  ;;  %v2130_v62 = vadd.f32 -2.0, %v1310_v60 }
 0x4b8   : > { %v1408_v49 = vsel %vm1400_vm13, 1.0, %v4015_v57  ;;  %1477 = vrot.lane.b32.xlu1 %v3167_v40, %s2309_s25 }
 0x4b9   : > { %v3174_v47 = vmul.f32 %v2940_v38, %v1408_v49  ;;  %vm1401_vm14 = vcmp.gt.f32.partialorder %v4018_v54, %v2130_v62 }
 0x4ba   : > { %v1409_v25 = vsel %vm1401_vm14, 1.0, %v4015_v57 }
 0x4bb   : > { %1480 = vrot.lane.b32.xlu0 %v3174_v47, %s2309_s25  ;;  %v3181_v18 = vmul.f32 %v2940_v38, %v1409_v25 }
 0x4bd   : > { %1483 = vrot.lane.b32.xlu1 %v3181_v18, %s2309_s25 }
 0x4bf   : > { %806 = vrot.lane.b32.xlu0 %v790_v50, %s2317_s5 }
 0x4c1   : > { %838 = vrot.lane.b32.xlu1 %v3070_v17, %s2318_s11  ;;  %v590_v17 = vmul.f32 0.008812229, %v3030_v10 }
 0x4c3   : > { %628 = vrot.lane.b32.xlu0 %v605_v35, %s2310_s17 }
 0x4c5   : > { %870 = vrot.lane.b32.xlu1 %v3073_v1, %s2319_s13  ;;  %v597_v1 = vmul.f32 0.008812229, %v589_v16 }
 0x4c7   : > { %676 = vrot.lane.b32.xlu0 %v653_v33, %s2311_s27 }
 0x4c9   : > { %902 = vrot.lane.b32.xlu1 %v3035_v0, %s2320_s14 }
 0x4cb   : > { %724 = vrot.lane.b32.xlu0 %v701_v59, %s2315_s3 }
 0x4cd   : > { %934 = vrot.lane.b32.xlu1 %v3038_v41, %s2321_s16 }
 0x4cf   : > { %772 = vrot.lane.b32.xlu0 %v749_v30, %s2316_s4 }
 0x4d1   : > { %974 = vrot.lane.b32.xlu1 %v590_v17, %s2322_s20 }
 0x4d3   : > { %820 = vrot.lane.b32.xlu0 %v797_v34, %s2317_s5 }
 0x4d5   : > { %852 = vrot.lane.b32.xlu1 %v749_v30, %s2318_s11 }
 0x4d7   : > { %884 = vrot.lane.b32.xlu0 %v701_v59, %s2319_s13 }
 0x4d9   : > { %916 = vrot.lane.b32.xlu1 %v653_v33, %s2320_s14 }
 0x4db   : > { %948 = vrot.lane.b32.xlu0 %v605_v35, %s2321_s16 }
 0x4dd   : > { %988 = vrot.lane.b32.xlu1 %v597_v1, %s2322_s20 }
 0x50d   : > { %v615_v0 = vpop.permute.xlu0 %614  ;;  %v663_v10 = vpop.permute.xlu1 %662 }
 0x50e   : > { %v638_v58 = vadd.f32 %v615_v0, %v590_v17 }
 0x510   : > { %v686_v9 = vadd.f32 %v663_v10, %v638_v58 }
 0x511   : > { %v711_v41 = vpop.permute.xlu0 %710  ;;  %v759_v61 = vpop.permute.xlu1 %758 }
 0x512   : > { %v734_v7 = vadd.f32 %v711_v41, %v686_v9 }
 0x514   : > { %v782_v8 = vadd.f32 %v759_v61, %v734_v7  ;;  %v4019_v7 = vrot.slane %v2881_v51, 3 }
 0x520   : > { %v1475_v48 = vpop.permute.xlu0 %1474 }
 0x521   : > { %v1476_v28 = vsel %vm143_vm0, %v1475_v48, %v3156_v29 }
 0x522   : > { %1496 = vrot.lane.b32.xlu0 %v1476_v28, %s2309_s25 }
 0x52a   : > { %v1478_v46 = vpop.permute.xlu1 %1477 }
 0x52b   : > { %v1479_v20 = vsel %vm143_vm0, %v1478_v46, %v3167_v40 }
 0x52c   : > { %1498 = vrot.lane.b32.xlu1 %v1479_v20, %s2309_s25 }
 0x52d   : > { %v1481_v22 = vpop.permute.xlu0 %1480 }
 0x52e   : > { %v1482_v27 = vsel %vm143_vm0, %v1481_v22, %v3174_v47 }
 0x52f   : > { %1500 = vrot.lane.b32.xlu0 %v1482_v27, %s2309_s25  ;;  %v1484_v36 = vpop.permute.xlu1 %1483 }
 0x530   : > { %v1485_v13 = vsel %vm143_vm0, %v1484_v36, %v3181_v18 }
 0x531   : > { %v807_v45 = vpop.permute.xlu0 %806  ;;  %1502 = vrot.lane.b32.xlu1 %v1485_v13, %s2309_s25 }
 0x532   : > { %v830_v21 = vadd.f32 %v807_v45, %v782_v8 }
 0x533   : > { %v839_v52 = vpop.permute.xlu1 %838 }
 0x534   : > { %v862_v44 = vadd.f32 %v839_v52, %v830_v21 }
 0x535   : > { %v629_v14 = vpop.permute.xlu0 %628 }
 0x536   : > { %v645_v12 = vadd.f32 %v629_v14, %v597_v1 }
 0x537   : > { %v871_v2 = vpop.permute.xlu1 %870 }
 0x538   : > { %v894_v15 = vadd.f32 %v871_v2, %v862_v44  ;;  %v4020_v2 = vrot.slane %v2881_v51, 4 }
 0x539   : > { %v677_v19 = vpop.permute.xlu0 %676 }
 0x53a   : > { %v693_v60 = vadd.f32 %v677_v19, %v645_v12  ;;  %v4021_v19 = vrot.slane %v2881_v51, 5 }
 0x53b   : > { %v903_v32 = vpop.permute.xlu1 %902 }
 0x53c   : > { %v926_v24 = vadd.f32 %v903_v32, %v894_v15 }
 0x53d   : > { %v725_v63 = vpop.permute.xlu0 %724 }
 0x53e   : > { %v741_v62 = vadd.f32 %v725_v63, %v693_v60 }
 0x53f   : > { %v935_v26 = vpop.permute.xlu1 %934 }
 0x540   : > { %v958_v54 = vadd.f32 %v935_v26, %v926_v24  ;;  %v4022_v26 = vrot.slane %v2881_v51, 6 }
 0x541   : > { %v773_v49 = vpop.permute.xlu0 %772 }
 0x542   : > { %v789_v25 = vadd.f32 %v773_v49, %v741_v62  ;;  %v1210_v49 = vrot.slane %v2881_v51, 1  ;;  %v1242_v62 = vrot.slane %v2881_v51, 2 }
 0x543   : > { %v975_v37 = vpop.permute.xlu1 %974 }
 0x544   : > { %v998_v16 = vadd.f32 %v975_v37, %v958_v54 }
 0x545   : > { %v821_v50 = vpop.permute.xlu0 %820 }
 0x546   : > { %v837_v35 = vadd.f32 %v821_v50, %v789_v25  ;;  %1014 = vrot.lane.b32.xlu0 %v998_v16, %s2323_s21  ;;  %v4023_v25 = vrot.slane %v2881_v51, 7  ;;  %v1194_v16 = vmul.f32 0.20056541, %v2881_v51 }
 0x547   : > { %v853_v33 = vpop.permute.xlu1 %852 }
 0x548   : > { %v869_v30 = vadd.f32 %v853_v33, %v837_v35  ;;  %v4024_v35 = vrot.slane %v2887_v5, 1 }
 0x549   : > { %v885_v59 = vpop.permute.xlu0 %884 }
 0x54a   : > { %v901_v17 = vadd.f32 %v885_v59, %v869_v30  ;;  %v1222_v33 = vsel %vm484_vm3, %v1210_v49, %v4024_v35  ;;  %v4025_v59 = vrot.slane %v2887_v5, 2 }
 0x54b   : > { %v917_v34 = vpop.permute.xlu1 %916 }
 0x54c   : > { %v933_v1 = vadd.f32 %v917_v34, %v901_v17  ;;  %v1254_v30 = vsel %vm517_vm4, %v1242_v62, %v4025_v59 }
 0x54d   : > { %v949_v0 = vpop.permute.xlu0 %948 }
 0x54e   : > { %v965_v41 = vadd.f32 %v949_v0, %v933_v1 }
 0x54f   : > { %v989_v48 = vpop.permute.xlu1 %988 }
 0x550   : > { %v1005_v10 = vadd.f32 %v989_v48, %v965_v41  ;;  %v1199_v48 = vmul.f32 0.20056541, %v3000_v56 }
 0x552   : > { %1028 = vrot.lane.b32.xlu1 %v1005_v10, %s2323_s21 }
 0x594   : > { %v1497_v28 = vpop.permute.xlu0 %1496 }
 0x595   : > { %v1510_v61 = vsel %vm143_vm0, %v1497_v28, %v3156_v29 }
 0x596   : > { %1528 = vrot.lane.b32.xlu0 %v1510_v61, %s2325_s22 }
 0x59e   : > { %v1499_v46 = vpop.permute.xlu1 %1498 }
 0x59f   : > { %v1511_v20 = vsel %vm143_vm0, %v1499_v46, %v3167_v40 }
 0x5a0   : > { %1530 = vrot.lane.b32.xlu1 %v1511_v20, %s2325_s22 }
 0x5a1   : > { %v1501_v58 = vpop.permute.xlu0 %1500 }
 0x5a2   : > { %v1512_v22 = vsel %vm143_vm0, %v1501_v58, %v3174_v47 }
 0x5a3   : > { %1532 = vrot.lane.b32.xlu0 %v1512_v22, %s2325_s22  ;;  %v1503_v27 = vpop.permute.xlu1 %1502 }
 0x5a4   : > { %v1513_v36 = vsel %vm143_vm0, %v1503_v27, %v3181_v18 }
 0x5a5   : > { %1534 = vrot.lane.b32.xlu1 %v1513_v36, %s2325_s22 }
 0x5a7   : > { %1560 = vrot.lane.b32.xlu0 %v1510_v61, %s2310_s17 }
 0x5a9   : > { %1562 = vrot.lane.b32.xlu1 %v1511_v20, %s2310_s17 }
 0x5ab   : > { %1564 = vrot.lane.b32.xlu0 %v1512_v22, %s2310_s17  ;;  %v1226_v22 = vmul.f32 0.17699836, %v1222_v33 }
 0x5ad   : > { %1566 = vrot.lane.b32.xlu1 %v1513_v36, %s2310_s17 }
 0x5b8   : > { %v3239_v9 = vpop.permute.xlu0 %1014 }
 0x5b9   : > { %v1038_v13 = vrot.slane %v3239_v9, 3  ;;  %v1063_v45 = vrot.slane %v3239_v9, 4  ;;  %v1096_v52 = vrot.slane %v3239_v9, 5  ;;  %v1129_v32 = vrot.slane %v3239_v9, 6 }
 0x5ba   : > { %v1161_v24 = vrot.slane %v3239_v9, 7 }
 0x5bb   : > { %v3248_v14 = vsel %vm1046_vm5, %v1038_v13, %v4019_v7  ;;  %v1078_v8 = vsel %vm1071_vm6, %v1063_v45, %v4020_v2  ;;  %v3258_v21 = vsel %vm1104_vm7, %v1096_v52, %v4021_v19  ;;  %v1143_v60 = vsel %vm410_vm1, %v1129_v32, %v4022_v26 }
 0x5bc   : > { %v1056_v44 = vmul.f32 0.008812229, %v3248_v14  ;;  %v3262_v63 = vmul.f32 0.027143577, %v1078_v8  ;;  %v1114_v15 = vmul.f32 0.06511406, %v3258_v21  ;;  %v1175_v50 = vsel %vm435_vm2, %v1161_v24, %v4023_v25 }
 0x5bd   : > { %v1146_v37 = vmul.f32 0.12164907, %v1143_v60  ;;  %v1178_v10 = vmul.f32 0.17699836, %v1175_v50  ;;  %v1274_v8 = vmul.f32 0.06511406, %v2902_v43 }
 0x5be   : > { %v1089_v12 = vadd.f32 %v3262_v63, %v1056_v44  ;;  %v4026_v43 = vrot.slane %v3000_v56, 2 }
 0x5c0   : > { %v1122_v54 = vadd.f32 %v1114_v15, %v1089_v12  ;;  %v1209_v15 = vrot.slane %v3239_v9, 1 }
 0x5c2   : > { %v1154_v17 = vadd.f32 %v1146_v37, %v1122_v54 }
 0x5c4   : > { %v3286_v34 = vpop.permute.xlu1 %1028  ;;  %v1186_v27 = vadd.f32 %v1178_v10, %v1154_v17  ;;  %v4027_v17 = vrot.slane %v3000_v56, 5 }
 0x5c5   : > { %v1045_v1 = vrot.slane %v3286_v34, 3  ;;  %v1070_v0 = vrot.slane %v3286_v34, 4  ;;  %v1103_v41 = vrot.slane %v3286_v34, 5  ;;  %v1136_v51 = vrot.slane %v3286_v34, 6 }
 0x5c6   : > { %v1168_v28 = vrot.slane %v3286_v34, 7  ;;  %v1216_v5 = vrot.slane %v3286_v34, 1  ;;  %v1248_v58 = vrot.slane %v3286_v34, 2 }
 0x5c7   : > { %v3297_v61 = vsel %vm1046_vm5, %v1045_v1, %v1038_v13  ;;  %v1079_v46 = vsel %vm1071_vm6, %v1070_v0, %v1063_v45  ;;  %v3303_v20 = vsel %vm1104_vm7, %v1103_v41, %v1096_v52  ;;  %v1144_v2 = vsel %vm410_vm1, %v1136_v51, %v1129_v32 }
 0x5c8   : > { %v1055_v36 = vmul.f32 0.008812229, %v3297_v61  ;;  %v3307_v7 = vmul.f32 0.027143577, %v1079_v46  ;;  %v1258_v13 = vmul.f32 0.12164907, %v1254_v30  ;;  %v1207_v45 = vadd.f32 %v1199_v48, %v3160_v6 }
 0x5c9   : > { %v1113_v52 = vmul.f32 0.06511406, %v3303_v20  ;;  %v1176_v44 = vsel %vm435_vm2, %v1168_v28, %v1161_v24  ;;  %v1217_v12 = vsel %vm484_vm3, %v1215_v42, %v1216_v5  ;;  %v1241_v32 = vrot.slane %v3239_v9, 2 }
 0x5ca   : > { %v1088_v19 = vadd.f32 %v3307_v7, %v1055_v36  ;;  %v1231_v26 = vmul.f32 0.17699836, %v1217_v12  ;;  %v1249_v6 = vsel %vm517_vm4, %v4026_v43, %v1248_v58  ;;  %v1145_v54 = vmul.f32 0.12164907, %v1144_v2 }
 0x5cb   : > { %v1202_v24 = vadd.f32 %v1194_v16, %v1186_v27  ;;  %v1047_v42 = vsel %vm1046_vm5, %v1044_v23, %v1045_v1  ;;  %v1177_v37 = vmul.f32 0.17699836, %v1176_v44  ;;  %v1072_v25 = vsel %vm1071_vm6, %v1069_v4, %v1070_v0 }
 0x5cc   : > { %v1121_v60 = vadd.f32 %v1113_v52, %v1088_v19  ;;  %v1239_v50 = vadd.f32 %v1231_v26, %v1207_v45  ;;  %v1263_v35 = vmul.f32 0.12164907, %v1249_v6  ;;  %v1087_v30 = vmul.f32 0.027143577, %v1072_v25 }
 0x5cd   : > { %v1234_v59 = vadd.f32 %v1226_v22, %v1202_v24  ;;  %v1105_v16 = vsel %vm1104_vm7, %v4027_v17, %v1103_v41  ;;  %v1223_v48 = vsel %vm484_vm3, %v1209_v15, %v1210_v49  ;;  %v1279_v1 = vmul.f32 0.06511406, %v1047_v42 }
 0x5ce   : > { %v1153_v33 = vadd.f32 %v1145_v54, %v1121_v60  ;;  %v1271_v23 = vadd.f32 %v1263_v35, %v1239_v50  ;;  %v1062_v10 = vmul.f32 0.008812229, %v1047_v42  ;;  %v1193_v46 = vmul.f32 0.20056541, %v3239_v9 }
 0x5cf   : > { %v4028_v4 = vrot.slane %v3000_v56, 6  ;;  %v1266_v27 = vadd.f32 %v1258_v13, %v1234_v59  ;;  %v1255_v36 = vsel %vm517_vm4, %v1241_v32, %v1242_v62  ;;  %v1120_v2 = vmul.f32 0.06511406, %v1105_v16 }
 0x5d0   : > { %v1185_v22 = vadd.f32 %v1177_v37, %v1153_v33  ;;  %v1287_v41 = vadd.f32 %v1279_v1, %v1271_v23  ;;  %v1095_v45 = vadd.f32 %v1087_v30, %v1062_v10  ;;  %v1225_v19 = vmul.f32 0.17699836, %v1223_v48  ;;  %v4029_v33 = vld [vmem:[#allocation14_spill] sm:$0xff] }
 0x5d1   : > { %v1137_v0 = vsel %vm410_vm1, %v4028_v4, %v1136_v51  ;;  %v1169_v49 = vsel %vm435_vm2, %v1167_v55, %v1168_v28  ;;  %v1282_v9 = vadd.f32 %v1274_v8, %v1266_v27  ;;  %v1303_v26 = vmul.f32 0.008812229, %v1105_v16 }
 0x5d2   : > { %v1201_v52 = vadd.f32 %v1193_v46, %v1185_v22  ;;  %v1152_v44 = vmul.f32 0.12164907, %v1137_v0  ;;  %v1295_v12 = vadd.f32 %v1287_v41, %v1087_v30  ;;  %v1128_v51 = vadd.f32 %v1120_v2, %v1095_v45 }
 0x5d3   : > { %v1290_v13 = vadd.f32 %v1282_v9, %v2912_v53  ;;  %v1298_v43 = vmul.f32 0.008812229, %v2920_v3  ;;  %v1257_v6 = vmul.f32 0.12164907, %v1255_v36  ;;  %v1184_v60 = vmul.f32 0.17699836, %v1169_v49 }
 0x5d4   : > { %v1233_v62 = vadd.f32 %v1225_v19, %v1201_v52  ;;  %v1311_v54 = vadd.f32 %v1303_v26, %v1295_v12  ;;  %v1160_v24 = vadd.f32 %v1152_v44, %v1128_v51  ;;  %v1224_v56 = vsel %vm484_vm3, %v1216_v5, %v1209_v15  ;;  %v4030_v5 = vld [vmem:[#allocation9_spill] sm:$0xff] }
 0x5d5   : > { %v1306_v42 = vadd.f32 %v1298_v43, %v1290_v13  ;;  %v1273_v28 = vmul.f32 0.06511406, %v3248_v14  ;;  %v1200_v8 = vmul.f32 0.20056541, %v3286_v34  ;;  %v1256_v53 = vsel %vm517_vm4, %v1248_v58, %v1241_v32 }
 0x5d6   : > { %v1265_v55 = vadd.f32 %v1257_v6, %v1233_v62  ;;  %v2131_v37 = vadd.f32 -2.0, %v1311_v54  ;;  %v1192_v25 = vadd.f32 %v1184_v60, %v1160_v24  ;;  %v1232_v35 = vmul.f32 0.17699836, %v1224_v56 }
 0x5d7   : > { %v2126_v3 = vadd.f32 -2.0, %v1306_v42  ;;  %v1297_v30 = vmul.f32 0.008812229, %v3258_v21  ;;  %v1264_v58 = vmul.f32 0.12164907, %v1256_v53  ;;  %v1422_v51 = vrot.slane %v3156_v29, 7 }
 0x5d8   : > { %v1281_v50 = vadd.f32 %v1273_v28, %v1265_v55  ;;  %vm1402_vm15 = vcmp.gt.f32.partialorder %v4029_v33, %v2131_v37  ;;  %v1208_v59 = vadd.f32 %v1200_v8, %v1192_v25  ;;  %v1280_v1 = vmul.f32 0.06511406, %v3297_v61 }
 0x5d9   : > { %vm1397_vm1 = vcmp.gt.f32.partialorder %v4030_v5, %v2126_v3  ;;  %v1410_v15 = vsel %vm1402_vm15, 1.0, %v4015_v57  ;;  %v1304_v46 = vmul.f32 0.008812229, %v3303_v20  ;;  %v1423_v13 = vrot.slane %v3167_v40, 7 }
 0x5da   : > { %v1289_v14 = vadd.f32 %v1281_v50, %v3262_v63  ;;  %v1405_v17 = vsel %vm1397_vm1, 1.0, %v4015_v57  ;;  %v3370_v34 = vmul.f32 0.0, %v1410_v15  ;;  %v1240_v16 = vadd.f32 %v1232_v35, %v1208_v59 }
 0x5db   : > { %v3372_v32 = vmul.f32 0.0, %v1405_v17  ;;  %v1447_v6 = vrot.slane %v3167_v40, 1  ;;  %v1424_v60 = vrot.slane %v3174_v47, 7  ;;  %v1432_v24 = vsel %vm435_vm2, %v1422_v51, %v1423_v13 }
 0x5dc   : > { %v1305_v48 = vadd.f32 %v1297_v30, %v1289_v14  ;;  %1486 = vrot.lane.b32.xlu1 %v3370_v34, %s2309_s25  ;;  %v1272_v23 = vadd.f32 %v1264_v58, %v1240_v16  ;;  %v1446_v56 = vrot.slane %v3156_v29, 1  ;;  %v1448_v42 = vrot.slane %v3174_v47, 1 }
 0x5dd   : > { %1471 = vrot.lane.b32.xlu0 %v3372_v32, %s2309_s25  ;;  %v1445_v45 = vrot.slane %v3372_v32, 1  ;;  %v1421_v26 = vrot.slane %v3372_v32, 7  ;;  %v1449_v28 = vrot.slane %v3181_v18, 1  ;;  %v1425_v8 = vrot.slane %v3181_v18, 7 }
 0x5de   : > { %v2125_v63 = vadd.f32 -2.0, %v1305_v48  ;;  %v1288_v21 = vadd.f32 %v1280_v1, %v1272_v23  ;;  %v1456_v37 = vsel %vm484_vm3, %v1446_v56, %v1447_v6  ;;  %v1439_v25 = vmax.f32 %v3167_v40, %v1432_v24 }
 0x5df   : > { %v1433_v43 = vsel %vm435_vm2, %v1421_v26, %v1422_v51  ;;  %v1431_v53 = vsel %vm435_vm2, %v1423_v13, %v1424_v60  ;;  %v1450_v35 = vrot.slane %v3370_v34, 1  ;;  %v1455_v33 = vsel %vm484_vm3, %v1447_v6, %v1448_v42 }
 0x5e0   : > { %vm1396_vm4 = vcmp.gt.f32.partialorder %v4007_v11, %v2125_v63  ;;  %v1296_v10 = vadd.f32 %v1288_v21, %v3307_v7  ;;  %v1426_v11 = vrot.slane %v3370_v34, 7  ;;  %v1438_v54 = vmax.f32 %v3156_v29, %v1433_v43 }
 0x5e1   : > { %v1404_v4 = vsel %vm1396_vm4, 1.0, %v4015_v57  ;;  %v1454_v59 = vsel %vm484_vm3, %v1448_v42, %v1449_v28  ;;  %v1440_v15 = vmax.f32 %v3174_v47, %v1431_v53  ;;  %v1430_v40 = vsel %vm435_vm2, %v1424_v60, %v1425_v8 }
 0x5e2   : > { %v1312_v0 = vadd.f32 %v1304_v46, %v1296_v10  ;;  %v3383_v22 = vmul.f32 0.0, %v1404_v4  ;;  %v1462_v50 = vmax.f32 %v1438_v54, %v1456_v37  ;;  %v3451_v30 = vsub.f32 1.0, %v2940_v38 }
 0x5e3   : > { %v1463_v17 = vmax.f32 %v1439_v25, %v1455_v33  ;;  %v1464_v58 = vmax.f32 %v1440_v15, %v1454_v59  ;;  %v1453_v48 = vsel %vm484_vm3, %v1449_v28, %v1450_v35  ;;  %v1441_v47 = vmax.f32 %v3181_v18, %v1430_v40 }
 0x5e4   : > { %v2132_v27 = vadd.f32 -2.0, %v1312_v0  ;;  %v1420_v2 = vrot.slane %v3383_v22, 7  ;;  %v1444_v41 = vrot.slane %v3383_v22, 1  ;;  %v1457_v18 = vsel %vm484_vm3, %v1445_v45, %v1446_v56 }
 0x5e5   : > { %v1465_v46 = vmax.f32 %v1441_v47, %v1453_v48 }
 0x5e6   : > { %vm1403_vm5 = vcmp.gt.f32.partialorder %v4008_v39, %v2132_v27  ;;  %v1458_v9 = vsel %vm484_vm3, %v1444_v41, %v1445_v45 }
 0x5e7   : > { %v1411_v61 = vsel %vm1403_vm5, 1.0, %v4015_v57 }
 0x5e8   : > { %v3387_v36 = vmul.f32 0.0, %v1411_v61 }
 0x5ea   : > { %v1451_v7 = vrot.slane %v3387_v36, 1  ;;  %v1427_v20 = vrot.slane %v3387_v36, 7 }
 0x5ec   : > { %v1435_v39 = vsel %vm435_vm2, %v1427_v20, %v1420_v2  ;;  %v1428_v57 = vsel %vm435_vm2, %v1426_v11, %v1427_v20  ;;  %v1459_v52 = vsel %vm484_vm3, %v1451_v7, %v1444_v41 }
 0x5ed   : > { %v1436_v19 = vmax.f32 %v3383_v22, %v1435_v39  ;;  %v1443_v49 = vmax.f32 %v3387_v36, %v1428_v57 }
 0x5ef   : > { %v3413_v44 = vmax.f32 %v1436_v19, %v1458_v9  ;;  %v3415_v12 = vmax.f32 %v1443_v49, %v1459_v52 }
 0x608   : > { %v1529_v62 = vpop.permute.xlu0 %1528 }
 0x609   : > { %v1550_v5 = vmax.f32 %v1462_v50, %v1529_v62 }
 0x612   : > { %v1531_v55 = vpop.permute.xlu1 %1530 }
 0x613   : > { %v1551_v1 = vmax.f32 %v1463_v17, %v1531_v55  ;;  %v1429_v17 = vsel %vm435_vm2, %v1425_v8, %v1426_v11 }
 0x614   : > { %v1442_v48 = vmax.f32 %v3370_v34, %v1429_v17 }
 0x615   : > { %v1533_v3 = vpop.permute.xlu0 %1532 }
 0x616   : > { %v1552_v63 = vmax.f32 %v1464_v58, %v1533_v3  ;;  %v1452_v58 = vsel %vm484_vm3, %v1450_v35, %v1451_v7 }
 0x617   : > { %v1535_v14 = vpop.permute.xlu1 %1534  ;;  %v1466_v11 = vmax.f32 %v1442_v48, %v1452_v58 }
 0x618   : > { %v1553_v61 = vmax.f32 %v1465_v46, %v1535_v14  ;;  %v1434_v14 = vsel %vm435_vm2, %v1420_v2, %v1421_v26 }
 0x619   : > { %v1561_v16 = vpop.permute.xlu0 %1560 }
 0x61a   : > { %v1582_v23 = vmax.f32 %v1550_v5, %v1561_v16  ;;  %v1437_v16 = vmax.f32 %v3372_v32, %v1434_v14 }
 0x61b   : > { %v1563_v10 = vpop.permute.xlu1 %1562 }
 0x61c   : > { %v3459_v21 = vmax.f32 %v1582_v23, %v3451_v30  ;;  %v1583_v4 = vmax.f32 %v1551_v1, %v1563_v10  ;;  %v1461_v26 = vmax.f32 %v1437_v16, %v1457_v18 }
 0x61d   : > { %v1565_v0 = vpop.permute.xlu0 %1564 }
 0x61e   : > { %v1584_v27 = vmax.f32 %v1552_v63, %v1565_v0  ;;  %1650 = vrot.lane.b32.xlu0 %v3459_v21, %s2309_s25  ;;  %v3464_v20 = vmax.f32 %v1583_v4, %v3451_v30 }
 0x61f   : > { %v1567_v39 = vpop.permute.xlu1 %1566 }
 0x620   : > { %v3467_v41 = vmax.f32 %v1584_v27, %v3451_v30  ;;  %v1585_v57 = vmax.f32 %v1553_v61, %v1567_v39  ;;  %1653 = vrot.lane.b32.xlu1 %v3464_v20, %s2309_s25  ;;  %v1599_v45 = vrot.slane %v3464_v20, 7  ;;  %v1623_v35 = vrot.slane %v3464_v20, 1 }
 0x621   : > { %v1622_v39 = vrot.slane %v3459_v21, 1 }
 0x622   : > { %1656 = vrot.lane.b32.xlu0 %v3467_v41, %s2309_s25  ;;  %v3474_v19 = vmax.f32 %v1585_v57, %v3451_v30  ;;  %v1600_v0 = vrot.slane %v3467_v41, 7 }
 0x624   : > { %1659 = vrot.lane.b32.xlu1 %v3474_v19, %s2309_s25  ;;  %v1625_v57 = vrot.slane %v3474_v19, 1 }
 0x64e   : > { %v1487_v49 = vpop.permute.xlu1 %1486 }
 0x64f   : > { %v1472_v9 = vpop.permute.xlu0 %1471  ;;  %v1488_v52 = vsel %vm143_vm0, %v1487_v49, %v3370_v34 }
 0x650   : > { %v1473_v51 = vsel %vm143_vm0, %v1472_v9, %v3372_v32  ;;  %1504 = vrot.lane.b32.xlu1 %v1488_v52, %s2309_s25  ;;  %v1624_v9 = vrot.slane %v3467_v41, 1  ;;  %v1601_v52 = vrot.slane %v3474_v19, 7 }
 0x651   : > { %1494 = vrot.lane.b32.xlu0 %v1473_v51, %s2309_s25  ;;  %v1632_v51 = vsel %vm484_vm3, %v1622_v39, %v1623_v35 }
 0x690   : > { %v1651_v13 = vpop.permute.xlu0 %1650 }
 0x691   : > { %v1652_v43 = vsel %vm143_vm0, %v1651_v13, %v3459_v21 }
 0x692   : > { %1672 = vrot.lane.b32.xlu0 %v1652_v43, %s2309_s25  ;;  %v1654_v62 = vpop.permute.xlu1 %1653  ;;  %v1607_v43 = vsel %vm435_vm2, %v1599_v45, %v1600_v0 }
 0x693   : > { %v1655_v6 = vsel %vm143_vm0, %v1654_v62, %v3464_v20 }
 0x694   : > { %v1657_v60 = vpop.permute.xlu0 %1656  ;;  %1674 = vrot.lane.b32.xlu1 %v1655_v6, %s2309_s25 }
 0x695   : > { %v1658_v54 = vsel %vm143_vm0, %v1657_v60, %v3467_v41 }
 0x696   : > { %1676 = vrot.lane.b32.xlu0 %v1658_v54, %s2309_s25  ;;  %v1660_v24 = vpop.permute.xlu1 %1659  ;;  %v1630_v54 = vsel %vm484_vm3, %v1624_v9, %v1625_v57 }
 0x697   : > { %v1661_v42 = vsel %vm143_vm0, %v1660_v24, %v3474_v19 }
 0x698   : > { %1678 = vrot.lane.b32.xlu1 %v1661_v42, %s2309_s25  ;;  %v1631_v42 = vsel %vm484_vm3, %v1623_v35, %v1624_v9 }
 0x6c2   : > { %v1505_v55 = vpop.permute.xlu1 %1504 }
 0x6c3   : > { %v1495_v28 = vpop.permute.xlu0 %1494  ;;  %v1514_v37 = vsel %vm143_vm0, %v1505_v55, %v3370_v34  ;;  %v1616_v55 = vmin.f32 %v3467_v41, %v1607_v43 }
 0x6c4   : > { %v1509_v25 = vsel %vm143_vm0, %v1495_v28, %v3372_v32  ;;  %1536 = vrot.lane.b32.xlu1 %v1514_v37, %s2325_s22  ;;  %v1598_v32 = vrot.slane %v3459_v21, 7 }
 0x6c5   : > { %1526 = vrot.lane.b32.xlu0 %v1509_v25, %s2325_s22 }
 0x6c6   : > { %v1608_v61 = vsel %vm435_vm2, %v1598_v32, %v1599_v45 }
 0x6c7   : > { %v1615_v13 = vmin.f32 %v3464_v20, %v1608_v61 }
 0x6c8   : > { %1568 = vrot.lane.b32.xlu1 %v1514_v37, %s2310_s17 }
 0x6c9   : > { %1558 = vrot.lane.b32.xlu0 %v1509_v25, %s2310_s17  ;;  %v1639_v37 = vmin.f32 %v1615_v13, %v1631_v42 }
 0x704   : > { %v1673_v53 = vpop.permute.xlu0 %1672 }
 0x705   : > { %v1686_v3 = vsel %vm143_vm0, %v1673_v53, %v3459_v21  ;;  %v1640_v53 = vmin.f32 %v1616_v55, %v1630_v54 }
 0x706   : > { %1704 = vrot.lane.b32.xlu0 %v1686_v3, %s2325_s22  ;;  %v1675_v50 = vpop.permute.xlu1 %1674 }
 0x707   : > { %v1687_v33 = vsel %vm143_vm0, %v1675_v50, %v3464_v20  ;;  %v1606_v20 = vsel %vm435_vm2, %v1600_v0, %v1601_v52 }
 0x708   : > { %v1677_v59 = vpop.permute.xlu0 %1676  ;;  %1706 = vrot.lane.b32.xlu1 %v1687_v33, %s2325_s22 }
 0x709   : > { %v1688_v5 = vsel %vm143_vm0, %v1677_v59, %v3467_v41  ;;  %v1617_v59 = vmin.f32 %v3474_v19, %v1606_v20 }
 0x70a   : > { %1708 = vrot.lane.b32.xlu0 %v1688_v5, %s2325_s22  ;;  %v1679_v15 = vpop.permute.xlu1 %1678 }
 0x70b   : > { %v1689_v40 = vsel %vm143_vm0, %v1679_v15, %v3474_v19 }
 0x70c   : > { %1710 = vrot.lane.b32.xlu1 %v1689_v40, %s2325_s22 }
 0x70e   : > { %1736 = vrot.lane.b32.xlu0 %v1686_v3, %s2310_s17 }
 0x710   : > { %1738 = vrot.lane.b32.xlu1 %v1687_v33, %s2310_s17 }
 0x712   : > { %1740 = vrot.lane.b32.xlu0 %v1688_v5, %s2310_s17 }
 0x714   : > { %1742 = vrot.lane.b32.xlu1 %v1689_v40, %s2310_s17 }
 0x716   : > { %1468 = vrot.lane.b32.xlu0 %v3383_v22, %s2309_s25 }
 0x718   : > { %1489 = vrot.lane.b32.xlu1 %v3387_v36, %s2309_s25 }
 0x736   : > { %v1537_v23 = vpop.permute.xlu1 %1536 }
 0x737   : > { %v1527_v2 = vpop.permute.xlu0 %1526  ;;  %v1554_v8 = vmax.f32 %v1466_v11, %v1537_v23 }
 0x738   : > { %v1549_v1 = vmax.f32 %v1461_v26, %v1527_v2 }
 0x73a   : > { %v1569_v47 = vpop.permute.xlu1 %1568 }
 0x73b   : > { %v1559_v63 = vpop.permute.xlu0 %1558  ;;  %v1586_v10 = vmax.f32 %v1554_v8, %v1569_v47 }
 0x73c   : > { %v1581_v46 = vmax.f32 %v1549_v1, %v1559_v63 }
 0x73d   : > { %v3550_v7 = vmax.f32 %v1586_v10, 1.0 }
 0x73e   : > { %v3552_v34 = vmax.f32 %v1581_v46, 1.0 }
 0x73f   : > { %1662 = vrot.lane.b32.xlu1 %v3550_v7, %s2309_s25  ;;  %v1626_v60 = vrot.slane %v3550_v7, 1 }
 0x740   : > { %1647 = vrot.lane.b32.xlu0 %v3552_v34, %s2309_s25  ;;  %v1597_v29 = vrot.slane %v3552_v34, 7 }
 0x741   : > { %v1629_v3 = vsel %vm484_vm3, %v1625_v57, %v1626_v60 }
 0x742   : > { %v1609_v56 = vsel %vm435_vm2, %v1597_v29, %v1598_v32  ;;  %v1641_v40 = vmin.f32 %v1617_v59, %v1629_v3 }
 0x743   : > { %v1614_v27 = vmin.f32 %v3459_v21, %v1609_v56 }
 0x745   : > { %v1638_v6 = vmin.f32 %v1614_v27, %v1632_v51 }
 0x778   : > { %v1705_v4 = vpop.permute.xlu0 %1704 }
 0x779   : > { %v1726_v24 = vmin.f32 %v1638_v6, %v1705_v4 }
 0x77a   : > { %v1707_v49 = vpop.permute.xlu1 %1706 }
 0x77b   : > { %v1727_v33 = vmin.f32 %v1639_v37, %v1707_v49 }
 0x77c   : > { %v1709_v62 = vpop.permute.xlu0 %1708 }
 0x77d   : > { %v1728_v5 = vmin.f32 %v1640_v53, %v1709_v62 }
 0x77e   : > { %v1711_v28 = vpop.permute.xlu1 %1710 }
 0x77f   : > { %v1729_v48 = vmin.f32 %v1641_v40, %v1711_v28 }
 0x780   : > { %v1737_v25 = vpop.permute.xlu0 %1736 }
 0x781   : > { %v1758_v50 = vmin.f32 %v1726_v24, %v1737_v25 }
 0x782   : > { %v1739_v15 = vpop.permute.xlu1 %1738 }
 0x783   : > { %v1766_v41 = vmul.f32 %v2940_v38, %v1758_v50  ;;  %v1759_v14 = vmin.f32 %v1727_v33, %v1739_v15 }
 0x784   : > { %v1741_v17 = vpop.permute.xlu0 %1740 }
 0x785   : > { %v3598_v16 = vmax.f32 %v1766_v41, %v3451_v30  ;;  %v1760_v58 = vmin.f32 %v1728_v5, %v1741_v17  ;;  %v1767_v23 = vmul.f32 %v2940_v38, %v1759_v14 }
 0x786   : > { %v1743_v2 = vpop.permute.xlu1 %1742 }
 0x787   : > { %v1768_v18 = vmul.f32 %v2940_v38, %v1760_v58  ;;  %1821 = vrot.lane.b32.xlu0 %v3598_v16, %s2309_s25  ;;  %v3605_v11 = vmax.f32 %v1767_v23, %v3451_v30  ;;  %v1761_v26 = vmin.f32 %v1729_v48, %v1743_v2  ;;  %v1602_v48 = vrot.slane %v3550_v7, 7 }
 0x788   : > { %v1469_v47 = vpop.permute.xlu0 %1468  ;;  %v1621_v2 = vrot.slane %v3552_v34, 1 }
 0x789   : > { %v3608_v8 = vmax.f32 %v1768_v18, %v3451_v30  ;;  %v1769_v1 = vmul.f32 %v2940_v38, %v1761_v26  ;;  %1824 = vrot.lane.b32.xlu1 %v3605_v11, %s2309_s25  ;;  %v1470_v10 = vsel %vm143_vm0, %v1469_v47, %v3383_v22  ;;  %v1605_v18 = vsel %vm435_vm2, %v1601_v52, %v1602_v48 }
 0x78a   : > { %v1490_v46 = vpop.permute.xlu1 %1489  ;;  %v1633_v19 = vsel %vm484_vm3, %v1621_v2, %v1622_v39  ;;  %v1782_v39 = vrot.slane %v3598_v16, 7 }
 0x78b   : > { %1827 = vrot.lane.b32.xlu0 %v3608_v8, %s2309_s25  ;;  %v3616_v63 = vmax.f32 %v1769_v1, %v3451_v30  ;;  %v1491_v32 = vsel %vm143_vm0, %v1490_v46, %v3387_v36 }
 0x78d   : > { %1830 = vrot.lane.b32.xlu1 %v3616_v63, %s2309_s25 }
 0x78f   : > { %1492 = vrot.lane.b32.xlu0 %v1470_v10, %s2309_s25 }
 0x791   : > { %1506 = vrot.lane.b32.xlu1 %v1491_v32, %s2309_s25 }
 0x7b1   : > { %v1663_v45 = vpop.permute.xlu1 %1662 }
 0x7b2   : > { %v1648_v56 = vpop.permute.xlu0 %1647  ;;  %v1664_v30 = vsel %vm143_vm0, %v1663_v45, %v3550_v7 }
 0x7b3   : > { %v1649_v35 = vsel %vm143_vm0, %v1648_v56, %v3552_v34  ;;  %1680 = vrot.lane.b32.xlu1 %v1664_v30, %s2309_s25 }
 0x7b4   : > { %1670 = vrot.lane.b32.xlu0 %v1649_v35, %s2309_s25 }
 0x7f9   : > { %v1822_v4 = vpop.permute.xlu0 %1821 }
 0x7fa   : > { %v1823_v0 = vsel %vm143_vm0, %v1822_v4, %v3598_v16 }
 0x7fb   : > { %1838 = vrot.lane.b32.xlu0 %v1823_v0, %s2309_s25  ;;  %v1825_v27 = vpop.permute.xlu1 %1824 }
 0x7fc   : > { %v1826_v61 = vsel %vm143_vm0, %v1825_v27, %v3605_v11 }
 0x7fd   : > { %v1828_v57 = vpop.permute.xlu0 %1827  ;;  %1840 = vrot.lane.b32.xlu1 %v1826_v61, %s2309_s25 }
 0x7fe   : > { %v1829_v49 = vsel %vm143_vm0, %v1828_v57, %v3608_v8  ;;  %v1783_v57 = vrot.slane %v3605_v11, 7 }
 0x7ff   : > { %1842 = vrot.lane.b32.xlu0 %v1829_v49, %s2309_s25  ;;  %v1831_v9 = vpop.permute.xlu1 %1830 }
 0x800   : > { %v1832_v51 = vsel %vm143_vm0, %v1831_v9, %v3616_v63  ;;  %v1801_v9 = vrot.slane %v3605_v11, 1 }
 0x801   : > { %v1493_v13 = vpop.permute.xlu0 %1492  ;;  %1844 = vrot.lane.b32.xlu1 %v1832_v51, %s2309_s25 }
 0x802   : > { %v1508_v43 = vsel %vm143_vm0, %v1493_v13, %v3383_v22  ;;  %v1784_v13 = vrot.slane %v3608_v8, 7 }
 0x803   : > { %1524 = vrot.lane.b32.xlu0 %v1508_v43, %s2325_s22  ;;  %v1507_v62 = vpop.permute.xlu1 %1506 }
 0x804   : > { %v1515_v6 = vsel %vm143_vm0, %v1507_v62, %v3387_v36  ;;  %v1790_v62 = vsel %vm435_vm2, %v1782_v39, %v1783_v57 }
 0x805   : > { %1556 = vrot.lane.b32.xlu1 %v1508_v43, %s2310_s17 }
 0x807   : > { %1538 = vrot.lane.b32.xlu0 %v1515_v6, %s2325_s22 }
 0x809   : > { %1570 = vrot.lane.b32.xlu1 %v1515_v6, %s2310_s17  ;;  %v1800_v6 = vrot.slane %v3598_v16, 1 }
 0x825   : > { %v1681_v54 = vpop.permute.xlu1 %1680 }
 0x826   : > { %v1671_v24 = vpop.permute.xlu0 %1670  ;;  %v1690_v42 = vsel %vm143_vm0, %v1681_v54, %v3550_v7  ;;  %v1803_v54 = vrot.slane %v3616_v63, 1 }
 0x827   : > { %v1685_v22 = vsel %vm143_vm0, %v1671_v24, %v3552_v34  ;;  %1712 = vrot.lane.b32.xlu1 %v1690_v42, %s2325_s22  ;;  %v1802_v24 = vrot.slane %v3608_v8, 1 }
 0x828   : > { %1702 = vrot.lane.b32.xlu0 %v1685_v22, %s2325_s22 }
 0x82b   : > { %1744 = vrot.lane.b32.xlu1 %v1690_v42, %s2310_s17 }
 0x82c   : > { %1734 = vrot.lane.b32.xlu0 %v1685_v22, %s2310_s17  ;;  %v1785_v22 = vrot.slane %v3616_v63, 7 }
 0x86d   : > { %v1839_v36 = vpop.permute.xlu0 %1838 }
 0x86e   : > { %v1849_v55 = vsel %vm143_vm0, %v1839_v36, %v3598_v16  ;;  %v1810_v36 = vsel %vm484_vm3, %v1800_v6, %v1801_v9 }
 0x86f   : > { %1862 = vrot.lane.b32.xlu0 %v1849_v55, %s2325_s22  ;;  %v1841_v28 = vpop.permute.xlu1 %1840 }
 0x870   : > { %v1850_v20 = vsel %vm143_vm0, %v1841_v28, %v3605_v11  ;;  %v1789_v28 = vsel %vm435_vm2, %v1783_v57, %v1784_v13 }
 0x871   : > { %v1843_v37 = vpop.permute.xlu0 %1842  ;;  %1864 = vrot.lane.b32.xlu1 %v1850_v20, %s2325_s22 }
 0x872   : > { %v1851_v25 = vsel %vm143_vm0, %v1843_v37, %v3608_v8 }
 0x873   : > { %1866 = vrot.lane.b32.xlu0 %v1851_v25, %s2325_s22  ;;  %v1845_v53 = vpop.permute.xlu1 %1844 }
 0x874   : > { %v1852_v3 = vsel %vm143_vm0, %v1845_v53, %v3616_v63  ;;  %v1808_v53 = vsel %vm484_vm3, %v1802_v24, %v1803_v54 }
 0x875   : > { %v1525_v50 = vpop.permute.xlu0 %1524  ;;  %1868 = vrot.lane.b32.xlu1 %v1852_v3, %s2325_s22 }
 0x876   : > { %v1548_v33 = vmax.f32 %v3413_v44, %v1525_v50  ;;  %v1809_v50 = vsel %vm484_vm3, %v1801_v9, %v1802_v24 }
 0x877   : > { %1886 = vrot.lane.b32.xlu0 %v1849_v55, %s2310_s17  ;;  %v1557_v59 = vpop.permute.xlu1 %1556  ;;  %v1795_v55 = vmin.f32 %v3605_v11, %v1790_v62  ;;  %v1788_v11 = vsel %vm435_vm2, %v1784_v13, %v1785_v22 }
 0x878   : > { %v1580_v5 = vmax.f32 %v1548_v33, %v1557_v59  ;;  %v1796_v33 = vmin.f32 %v3608_v8, %v1789_v28 }
 0x879   : > { %v1539_v41 = vpop.permute.xlu0 %1538  ;;  %1888 = vrot.lane.b32.xlu1 %v1850_v20, %s2310_s17 }
 0x87a   : > { %v3675_v15 = vmax.f32 %v1580_v5, 1.0  ;;  %v1555_v40 = vmax.f32 %v3415_v12, %v1539_v41  ;;  %v1814_v5 = vmin.f32 %v1795_v55, %v1809_v50 }
 0x87b   : > { %1890 = vrot.lane.b32.xlu0 %v1851_v25, %s2310_s17  ;;  %v1571_v14 = vpop.permute.xlu1 %1570 }
 0x87c   : > { %v1587_v17 = vmax.f32 %v1555_v40, %v1571_v14  ;;  %v1596_v44 = vrot.slane %v3675_v15, 7  ;;  %v1815_v40 = vmin.f32 %v1796_v33, %v1808_v53 }
 0x87d   : > { %1892 = vrot.lane.b32.xlu1 %v1852_v3, %s2310_s17 }
 0x87e   : > { %v3680_v58 = vmax.f32 %v1587_v17, 1.0  ;;  %v1610_v23 = vsel %vm435_vm2, %v1596_v44, %v1597_v29  ;;  %v1618_v29 = vmin.f32 %v3550_v7, %v1605_v18  ;;  %v1797_v18 = vmin.f32 %v3616_v63, %v1788_v11 }
 0x87f   : > { %1644 = vrot.lane.b32.xlu0 %v3675_v15, %s2309_s25  ;;  %v1613_v26 = vmin.f32 %v3552_v34, %v1610_v23 }
 0x880   : > { %v1627_v12 = vrot.slane %v3680_v58, 1 }
 0x881   : > { %1665 = vrot.lane.b32.xlu1 %v3680_v58, %s2309_s25  ;;  %v1637_v46 = vmin.f32 %v1613_v26, %v1633_v19 }
 0x882   : > { %v1628_v1 = vsel %vm484_vm3, %v1626_v60, %v1627_v12 }
 0x883   : > { %v1642_v10 = vmin.f32 %v1618_v29, %v1628_v1 }
 0x899   : > { %v1713_v47 = vpop.permute.xlu1 %1712 }
 0x89a   : > { %v1703_v52 = vpop.permute.xlu0 %1702  ;;  %v1730_v32 = vmin.f32 %v1642_v10, %v1713_v47 }
 0x89b   : > { %v1725_v45 = vmin.f32 %v1637_v46, %v1703_v52 }
 0x89d   : > { %v1745_v56 = vpop.permute.xlu1 %1744 }
 0x89e   : > { %v1735_v30 = vpop.permute.xlu0 %1734  ;;  %v1762_v35 = vmin.f32 %v1730_v32, %v1745_v56 }
 0x89f   : > { %v1757_v4 = vmin.f32 %v1725_v45, %v1735_v30 }
 0x8a0   : > { %v1770_v60 = vmul.f32 0.0, %v1762_v35 }
 0x8a1   : > { %v1765_v0 = vmul.f32 0.0, %v1757_v4 }
 0x8a2   : > { %v3716_v27 = vmax.f32 %v1770_v60, 1.0 }
 0x8a3   : > { %v3718_v61 = vmax.f32 %v1765_v0, 1.0 }
 0x8a4   : > { %1833 = vrot.lane.b32.xlu1 %v3716_v27, %s2309_s25  ;;  %v1804_v25 = vrot.slane %v3716_v27, 1 }
 0x8a5   : > { %1818 = vrot.lane.b32.xlu0 %v3718_v61, %s2309_s25  ;;  %v1781_v21 = vrot.slane %v3718_v61, 7 }
 0x8a6   : > { %v1807_v14 = vsel %vm484_vm3, %v1803_v54, %v1804_v25 }
 0x8a7   : > { %v1791_v49 = vsel %vm435_vm2, %v1781_v21, %v1782_v39  ;;  %v1816_v29 = vmin.f32 %v1797_v18, %v1807_v14  ;;  %v1603_v18 = vrot.slane %v3680_v58, 7 }
 0x8a8   : > { %v1794_v43 = vmin.f32 %v3598_v16, %v1791_v49 }
 0x8aa   : > { %v1813_v37 = vmin.f32 %v1794_v43, %v1810_v36 }
 0x8e1   : > { %v1863_v51 = vpop.permute.xlu0 %1862 }
 0x8e2   : > { %v1879_v3 = vmin.f32 %v1813_v37, %v1863_v51 }
 0x8e3   : > { %v1865_v42 = vpop.permute.xlu1 %1864 }
 0x8e4   : > { %v1880_v23 = vmin.f32 %v1814_v5, %v1865_v42 }
 0x8e5   : > { %v1867_v20 = vpop.permute.xlu0 %1866 }
 0x8e6   : > { %v1881_v26 = vmin.f32 %v1815_v40, %v1867_v20 }
 0x8e7   : > { %v1869_v59 = vpop.permute.xlu1 %1868 }
 0x8e8   : > { %v1882_v10 = vmin.f32 %v1816_v29, %v1869_v59 }
 0x8e9   : > { %v1887_v41 = vpop.permute.xlu0 %1886 }
 0x8ea   : > { %v1903_v17 = vmin.f32 %v1879_v3, %v1887_v41 }
 0x8eb   : > { %v1889_v1 = vpop.permute.xlu1 %1888 }
 0x8ec   : > { %v3763_v8 = vmul.f32 %v2940_v38, %v1903_v17  ;;  %v1904_v47 = vmin.f32 %v1880_v23, %v1889_v1  ;;  %v1620_v1 = vrot.slane %v3675_v15, 1 }
 0x8ed   : > { %v1891_v19 = vpop.permute.xlu0 %1890 }
 0x8ee   : > { %v1905_v52 = vmin.f32 %v1881_v26, %v1891_v19  ;;  %1940 = vrot.lane.b32.xlu0 %v3763_v8, %s2309_s25  ;;  %v3768_v46 = vmul.f32 %v2940_v38, %v1904_v47  ;;  %v1611_v26 = vsel %vm435_vm2, %v1603_v18, %v1596_v44  ;;  %v1634_v47 = vsel %vm484_vm3, %v1620_v1, %v1621_v2 }
 0x8ef   : > { %v1893_v45 = vpop.permute.xlu1 %1892  ;;  %v1612_v29 = vmin.f32 %v3675_v15, %v1611_v26  ;;  %v1604_v44 = vsel %vm435_vm2, %v1602_v48, %v1603_v18  ;;  %v1635_v34 = vsel %vm484_vm3, %v1627_v12, %v1620_v1  ;;  %v1799_v48 = vrot.slane %v3718_v61, 1 }
 0x8f0   : > { %v3771_v32 = vmul.f32 %v2940_v38, %v1905_v52  ;;  %v1906_v56 = vmin.f32 %v1882_v10, %v1893_v45  ;;  %1943 = vrot.lane.b32.xlu1 %v3768_v46, %s2309_s25  ;;  %v1916_v63 = vrot.slane %v3768_v46, 7 }
 0x8f1   : > { %v1645_v30 = vpop.permute.xlu0 %1644  ;;  %v1636_v52 = vmin.f32 %v1612_v29, %v1634_v47  ;;  %v1811_v12 = vsel %vm484_vm3, %v1799_v48, %v1800_v6 }
 0x8f2   : > { %1946 = vrot.lane.b32.xlu0 %v3771_v32, %s2309_s25  ;;  %v3778_v35 = vmul.f32 %v2940_v38, %v1906_v56  ;;  %v1646_v4 = vsel %vm143_vm0, %v1645_v30, %v3675_v15 }
 0x8f3   : > { %v1666_v60 = vpop.permute.xlu1 %1665 }
 0x8f4   : > { %1949 = vrot.lane.b32.xlu1 %v3778_v35, %s2309_s25  ;;  %v1667_v0 = vsel %vm143_vm0, %v1666_v60, %v3680_v58 }
 0x8f6   : > { %1668 = vrot.lane.b32.xlu0 %v1646_v4, %s2309_s25  ;;  %v1619_v4 = vmin.f32 %v3680_v58, %v1604_v44 }
 0x8f8   : > { %1682 = vrot.lane.b32.xlu1 %v1667_v0, %s2309_s25  ;;  %v1643_v2 = vmin.f32 %v1619_v4, %v1635_v34 }
 0x916   : > { %v1834_v39 = vpop.permute.xlu1 %1833 }
 0x917   : > { %v1819_v57 = vpop.permute.xlu0 %1818  ;;  %v1835_v49 = vsel %vm143_vm0, %v1834_v39, %v3716_v27 }
 0x918   : > { %v1820_v9 = vsel %vm143_vm0, %v1819_v57, %v3718_v61  ;;  %1846 = vrot.lane.b32.xlu1 %v1835_v49, %s2309_s25 }
 0x919   : > { %1836 = vrot.lane.b32.xlu0 %v1820_v9, %s2309_s25 }
 0x960   : > { %v1941_v51 = vpop.permute.xlu0 %1940 }
 0x961   : > { %v1942_v13 = vsel %vm143_vm0, %v1941_v51, %v3763_v8 }
 0x962   : > { %1952 = vrot.lane.b32.xlu0 %v1942_v13, %s2309_s25  ;;  %v1944_v43 = vpop.permute.xlu1 %1943 }
 0x963   : > { %v1945_v62 = vsel %vm143_vm0, %v1944_v43, %v3768_v46 }
 0x964   : > { %v1947_v54 = vpop.permute.xlu0 %1946  ;;  %1954 = vrot.lane.b32.xlu1 %v1945_v62, %s2309_s25 }
 0x965   : > { %v1948_v24 = vsel %vm143_vm0, %v1947_v54, %v3771_v32 }
 0x966   : > { %1956 = vrot.lane.b32.xlu0 %v1948_v24, %s2309_s25  ;;  %v1950_v42 = vpop.permute.xlu1 %1949  ;;  %v1786_v24 = vrot.slane %v3716_v27, 7 }
 0x967   : > { %v1951_v36 = vsel %vm143_vm0, %v1950_v42, %v3778_v35 }
 0x968   : > { %v1669_v55 = vpop.permute.xlu0 %1668  ;;  %1958 = vrot.lane.b32.xlu1 %v1951_v36, %s2309_s25  ;;  %s2039_s25 = sshll.u32 %s134_s30, 4  ;;  %s3912_s25 = int_to_ptr.vmem [resolvable:$true] %s2039_s25 }
 0x969   : > { %v1684_v28 = vsel %vm143_vm0, %v1669_v55, %v3675_v15  ;;  %s2238_s3 = scalar_lea.vmem %s3912_s25, 512 }
 0x96a   : > { %1700 = vrot.lane.b32.xlu0 %v1684_v28, %s2325_s22  ;;  %v1683_v20 = vpop.permute.xlu1 %1682  ;;  %p2239_p6 = scmp.ne.s32.totalorder %s3912_s25, %s2238_s3 }
 0x96b   : > { %v1691_v37 = vsel %vm143_vm0, %v1683_v20, %v3680_v58 }
 0x96c   : > { %1732 = vrot.lane.b32.xlu1 %v1684_v28, %s2310_s17  ;;  %p2240_p12 = pnand %p2239_p6, %p4031_p11 }
 0x96e   : > { %1714 = vrot.lane.b32.xlu0 %v1691_v37, %s2325_s22  ;;  %p2241_p13 = pneg %p2240_p12 }
 0x970   : > { %1746 = vrot.lane.b32.xlu1 %v1691_v37, %s2310_s17 }
 0x98a   : > { %v1847_v53 = vpop.permute.xlu1 %1846 }
 0x98b   : > { %v1837_v3 = vpop.permute.xlu0 %1836  ;;  %v1853_v50 = vsel %vm143_vm0, %v1847_v53, %v3716_v27 }
 0x98c   : > { %v1848_v33 = vsel %vm143_vm0, %v1837_v3, %v3718_v61  ;;  %1870 = vrot.lane.b32.xlu1 %v1853_v50, %s2325_s22  ;;  %v1915_v3 = vrot.slane %v3763_v8, 7 }
 0x98d   : > { %1860 = vrot.lane.b32.xlu0 %v1848_v33, %s2325_s22 }
 0x990   : > { %1894 = vrot.lane.b32.xlu1 %v1853_v50, %s2310_s17 }
 0x991   : > { %1884 = vrot.lane.b32.xlu0 %v1848_v33, %s2310_s17  ;;  %v1928_v33 = vrot.slane %v3768_v46, 1 }
 0x9d4   : > { %v1953_v11 = vpop.permute.xlu0 %1952 }
 0x9d5   : > { %v1960_v59 = vsel %vm143_vm0, %v1953_v11, %v3763_v8 }
 0x9d6   : > { %1968 = vrot.lane.b32.xlu0 %v1960_v59, %s2325_s22  ;;  %v1955_v5 = vpop.permute.xlu1 %1954 }
 0x9d7   : > { %v1961_v41 = vsel %vm143_vm0, %v1955_v5, %v3768_v46  ;;  %v1921_v5 = vsel %vm435_vm2, %v1915_v3, %v1916_v63 }
 0x9d8   : > { %v1957_v40 = vpop.permute.xlu0 %1956  ;;  %1970 = vrot.lane.b32.xlu1 %v1961_v41, %s2325_s22  ;;  %v1924_v26 = vmax.f32 %v3768_v46, %v1921_v5 }
 0x9d9   : > { %v1962_v14 = vsel %vm143_vm0, %v1957_v40, %v3771_v32  ;;  %v1930_v40 = vrot.slane %v3778_v35, 1 }
 0x9da   : > { %1972 = vrot.lane.b32.xlu0 %v1962_v14, %s2325_s22  ;;  %v1959_v17 = vpop.permute.xlu1 %1958 }
 0x9db   : > { %v1963_v23 = vsel %vm143_vm0, %v1959_v17, %v3778_v35  ;;  %vm2020_vm0 = vcmask 261120  }
 0x9dc   : > { %1974 = vrot.lane.b32.xlu1 %v1963_v23, %s2325_s22  ;;  %v1701_v19 = vpop.permute.xlu0 %1700 }
 0x9dd   : > { %v1724_v45 = vmin.f32 %v1636_v52, %v1701_v19 }
 0x9de   : > { %1984 = vrot.lane.b32.xlu0 %v1960_v59, %s2310_s17  ;;  %v1733_v10 = vpop.permute.xlu1 %1732 }
 0x9df   : > { %v1756_v56 = vmin.f32 %v1724_v45, %v1733_v10 }
 0x9e0   : > { %1986 = vrot.lane.b32.xlu1 %v1961_v41, %s2310_s17  ;;  %v1715_v15 = vpop.permute.xlu0 %1714  ;;  %v1927_v41 = vrot.slane %v3763_v8, 1 }
 0x9e1   : > { %v1764_v30 = vmul.f32 0.0, %v1756_v56  ;;  %v1731_v57 = vmin.f32 %v1643_v2, %v1715_v15 }
 0x9e2   : > { %1988 = vrot.lane.b32.xlu0 %v1962_v14, %s2310_s17  ;;  %v1747_v39 = vpop.permute.xlu1 %1746  ;;  %v1929_v14 = vrot.slane %v3771_v32, 1  ;;  %v1935_v18 = vsel %vm484_vm3, %v1927_v41, %v1928_v33 }
 0x9e3   : > { %v1772_v60 = vmax.f32 %v1764_v30, 1.0  ;;  %v1763_v49 = vmin.f32 %v1731_v57, %v1747_v39 }
 0x9e4   : > { %1990 = vrot.lane.b32.xlu1 %v1963_v23, %s2310_s17  ;;  %v1918_v23 = vrot.slane %v3778_v35, 7  ;;  %v1934_v10 = vsel %vm484_vm3, %v1928_v33, %v1929_v14  ;;  %s2139_s17 = sshll.u32 %s2361_s10, 9  ;;  %s2327_s10 = smov [#allocation5]  }
 0x9e5   : > { %v1780_v0 = vrot.slane %v1772_v60, 7  ;;  %v1771_v51 = vmul.f32 0.0, %v1763_v49  ;;  %v1937_v46 = vmax.f32 %v1924_v26, %v1934_v10  ;;  %s3917_s29 = scalar_lea.hbm %s3962_s1, %s2139_s17  ;;  %s2242_s4 = sshll.u32 %s2327_s10, 4  ;;  %s2243_s4 = int_to_ptr.vmem [resolvable:$false] %s2242_s4 }
 0x9e6   : > { %s2244_s5 = scalar_lea.vmem %s2243_s4, 1024  ;;  %p2245_p8 = scmp.lt.s32.totalorder %s3912_s25, %s2243_s4 }
 0x9e7   : > { %v1792_v7 = vsel %vm435_vm2, %v1780_v0, %v1781_v21  ;;  %v1779_v13 = vmax.f32 %v1771_v51, 1.0  ;;  %v1787_v21 = vsel %vm435_vm2, %v1785_v22, %v1786_v24  ;;  %p2246_p10 = scmp.lt.s32.totalorder %s2244_s5, %s2238_s3 }
 0x9e8   : > { %v1793_v58 = vmin.f32 %v3718_v61, %v1792_v7  ;;  %v1798_v6 = vmin.f32 %v3716_v27, %v1787_v21 }
 0x9e9   : > { %v1805_v42 = vrot.slane %v1779_v13, 1  ;;  %p2247_p0 = por %p2246_p10, %p2245_p8 }
 0x9ea   : > { %v1812_v43 = vmin.f32 %v1793_v58, %v1811_v12 }
 0x9eb   : > { %v1806_v16 = vsel %vm484_vm3, %v1804_v25, %v1805_v42  ;;  %v1917_v25 = vrot.slane %v3771_v32, 7  ;;  %p2248_p2 = pnand %p2247_p0, %p2241_p13 }
 0x9ec   : > { %v1817_v28 = vmin.f32 %v1798_v6, %v1806_v16 }
 0x9ed   : > { %v1920_v1 = vsel %vm435_vm2, %v1916_v63, %v1917_v25  ;;  %v1919_v56 = vsel %vm435_vm2, %v1917_v25, %v1918_v23 }
 0x9ee   : > { %v1925_v45 = vmax.f32 %v3771_v32, %v1920_v1  ;;  %v1926_v2 = vmax.f32 %v3778_v35, %v1919_v56 }
 0x9fe   : > { %v1871_v55 = vpop.permute.xlu1 %1870 }
 0x9ff   : > { %v1861_v9 = vpop.permute.xlu0 %1860  ;;  %v1883_v53 = vmin.f32 %v1817_v28, %v1871_v55 }
 0xa00   : > { %v1878_v54 = vmin.f32 %v1812_v43, %v1861_v9 }
 0xa02   : > { %v1895_v37 = vpop.permute.xlu1 %1894 }
 0xa03   : > { %v1885_v62 = vpop.permute.xlu0 %1884  ;;  %v1907_v50 = vmin.f32 %v1883_v53, %v1895_v37 }
 0xa04   : > { %v1902_v36 = vmin.f32 %v1878_v54, %v1885_v62 }
 0xa05   : > { %v1913_v59 = vmul.f32 0.0, %v1907_v50 }
 0xa06   : > { %v1908_v61 = vmul.f32 0.0, %v1902_v36 }
 0xa07   : > { %v1931_v47 = vrot.slane %v1913_v59, 1 }
 0xa08   : > { %v1914_v20 = vrot.slane %v1908_v61, 7 }
 0xa09   : > { %v1932_v60 = vsel %vm484_vm3, %v1930_v40, %v1931_v47 }
 0xa0a   : > { %v1922_v22 = vsel %vm435_vm2, %v1914_v20, %v1915_v3  ;;  %v1939_v32 = vmax.f32 %v1926_v2, %v1932_v60 }
 0xa0b   : > { %v1923_v27 = vmax.f32 %v3763_v8, %v1922_v22  ;;  %v1933_v8 = vsel %vm484_vm3, %v1929_v14, %v1930_v40 }
 0xa0c   : > { %v1938_v4 = vmax.f32 %v1925_v45, %v1933_v8 }
 0xa0d   : > { %v1936_v19 = vmax.f32 %v1923_v27, %v1935_v18 }
 0xa48   : > { %v1969_v11 = vpop.permute.xlu0 %1968 }
 0xa49   : > { %v1980_v52 = vmax.f32 %v1936_v19, %v1969_v11 }
 0xa4a   : > { %v1971_v17 = vpop.permute.xlu1 %1970 }
 0xa4b   : > { %v1981_v15 = vmax.f32 %v1937_v46, %v1971_v17 }
 0xa4c   : > { %v1973_v29 = vpop.permute.xlu0 %1972 }
 0xa4d   : > { %v1982_v0 = vmax.f32 %v1938_v4, %v1973_v29 }
 0xa4e   : > { %v1975_v30 = vpop.permute.xlu1 %1974 }
 0xa4f   : > { %v1983_v9 = vmax.f32 %v1939_v32, %v1975_v30 }
 0xa50   : > { %v1985_v44 = vpop.permute.xlu0 %1984 }
 0xa51   : > { %v1996_v34 = vmax.f32 %v1980_v52, %v1985_v44 }
 0xa52   : > { %v1987_v57 = vpop.permute.xlu1 %1986 }
 0xa53   : > { %v2000_v39 = vmul.f32 %v2940_v38, %v1996_v34  ;;  %v1997_v49 = vmax.f32 %v1981_v15, %v1987_v57 }
 0xa54   : > { %v1989_v7 = vpop.permute.xlu0 %1988 }
 0xa55   : > { %v1998_v48 = vmax.f32 %v1982_v0, %v1989_v7  ;;  %2008 = vrot.lane.b32.xlu0 %v2000_v39, %s2326_s24  ;;  %v2001_v31 = vmul.f32 %v2940_v38, %v1997_v49 }
 0xa56   : > { %v1991_v58 = vpop.permute.xlu1 %1990 }
 0xa57   : > { %v2002_v51 = vmul.f32 %v2940_v38, %v1998_v48  ;;  %v1999_v12 = vmax.f32 %v1983_v9, %v1991_v58  ;;  %2010 = vrot.lane.b32.xlu1 %v2001_v31, %s2326_s24 }
 0xa59   : > { %2012 = vrot.lane.b32.xlu0 %v2002_v51, %s2326_s24  ;;  %v2003_v35 = vmul.f32 %v2940_v38, %v1999_v12 }
 0xa5b   : > { %2014 = vrot.lane.b32.xlu1 %v2003_v35, %s2326_s24 }
 0xac7   : > { %v2009_v13 = vpop.permute.xlu0 %2008 }
 0xac8   : > { %2021 = vst.msk [vmem:[%s134_s30] sm:$0xff] %vm2020_vm0, %v2009_v13 }
 0xac9   : > { %v2011_v43 = vpop.permute.xlu1 %2010 }
 0xaca   : > { %2022 = vst.msk [vmem:[%s134_s30 + $0x8] sm:$0xff] %vm2020_vm0, %v2011_v43 }
 0xacb   : > { %v2013_v62 = vpop.permute.xlu0 %2012 }
 0xacc   : > { %2023 = vst.msk [vmem:[%s134_s30 + $0x10] sm:$0xff] %vm2020_vm0, %v2013_v62 }
 0xacd   : > { %v2015_v38 = vpop.permute.xlu1 %2014 }
 0xace   : > { %2024 = vst.msk [vmem:[%s134_s30 + $0x18] sm:$0xff] %vm2020_vm0, %v2015_v38 }
 0xacf   : > { %2251 = shalt.err (!%p2248_p2)
}
 0xad0   : > { %s2252_s11 = scalar_lea.hbm %s3917_s29, 512  ;;  %s2256_s16 = scalar_lea.hbm %s3962_s1, 1024 }
 0xad1   : > { %p2253_p4 = scmp.ne.s32.totalorder %s3917_s29, %s2252_s11  ;;  %p2257_p9 = scmp.lt.u32.totalorder %s3917_s29, %s3962_s1 }
 0xad2   : > { %p2258_p1 = scmp.lt.u32.totalorder %s2256_s16, %s2252_s11  ;;  %p2260_p6 = scmp.lt.u32.totalorder %s2252_s11, %s3917_s29 }
 0xad3   : > { %p2254_p5 = pnand %p2253_p4, %p4031_p11 }
 0xad4   : > { %p2259_p3 = por %p2258_p1, %p2257_p9 }
 0xad5   : > { %p2255_p7 = pneg %p2254_p5 }
 0xad6   : > { %p2261_p12 = por %p2260_p6, %p2259_p3 }
 0xad8   : > { %p2262_p13 = pnand %p2261_p12, %p2255_p7 }
 0xada   : > { %2265 = shalt.err (!%p2262_p13)
}
 0xadb   : > { %s2328_s22 = smov 128   ;;  %s2329_s24 = smov 8  }
 0xadc   : > { %2142 = dma.vmem_to_hbm [thread:$0]  (%p4031_p11), %s3912_s25, 512, %s3917_s29, %s2026_s2, %s2328_s22, %s2328_s22, %s2329_s24  }
 0xadd PF: > { %s2054_s26 = sand.u32 1, %s2292_s6   ;;  %p4032_p8 = scmp.ne.s32.totalorder %s3992_s19, 0 }
 0xade   : > { %p4033_p10 = scmp.ge.s32.totalorder %s2304_s9, 2  ;;  %s2055_s30 = scalar_lea.sflag [#allocation4], %s2054_s26 }
 0xae0   : > { %p2149_p0 = pnand %p4033_p10, %p4032_p8 }
 0xae2   : > { %2287 = dma.done.wait (!%p2149_p0), %s2055_s30, 512  }
 0xae3   : > { %2289 = vsyncadd (!%p2149_p0), %s2055_s30, 4294966784  ;;  %p14_p2 = scmp.ge.s32.totalorder %s2365_s12, 4   ;;  %s4034_s6 = smov %s2296_s7 }
 0xae4   : > { %s4035_s7 = smov %s2300_s8  ;;  %s4036_s8 = smov %s2377_s15 }
 0xae5   : > { %s4037_s9 = smov %s2365_s12  ;;  %16 = sbr.rel (!%p14_p2) target bundleno = 5 (0x5), region = 69 }
 0xaec   :  { %2060 = vsyncpa [#allocation3], 1 }
 0xaed   :  { %2062 = vsyncpa [#allocation3 + $0x1], 1 }
 0xaee   :  { %2063 = vsyncpa [#allocation4], 1 }
 0xaef   :  { %2065 = vsyncpa [#allocation4 + $0x1], 1 }

</bundles_post_ra>
